<compile_context>
chip_gen: v5e
topology: v5e:2x2
jax: 0.10.0
libtpu: 0.0.40
codegen_flags: <defaults>
</compile_context>

<pallas_src>
import jax
import jax.numpy as jnp
from jax.experimental import pallas as pl
from jax.experimental.pallas import tpu as pltpu

INTENSITY_COUNT = 1024
LATENT_SIZE = 8
BATCH = 1024         # >= 4 grid steps: amortizes weight fetch + step overhead

H1 = INTENSITY_COUNT // 8    # 128
H2 = INTENSITY_COUNT // 64   # 16


def vae_kernel(x_ref,
               w_e1, b_e1, w_e2, b_e2,
               w_mid, b_mid,
               w_d2, b_d2, w_d3, b_d3,
               o_ref):
    x = x_ref[...]                                            # (tile_b, 1024)
    if x.dtype != jnp.bfloat16:
        x = x.astype(jnp.bfloat16)                            # only if caller sent f32

    # ----- encode -----
    # enc1: bf16 operands on the MXU, f32 accumulate, f32 tanh on the EUP.
    h = jnp.tanh(jnp.dot(x, w_e1[...],
                         preferred_element_type=jnp.float32) + b_e1[...])
    # enc2 (f32, tiny)
    h = jnp.tanh(jnp.dot(h, w_e2[...],
                         preferred_element_type=jnp.float32) + b_e2[...])

    # ----- fused enc3 + dec1 -----
    # Exact fold: z = h @ w_e3 + b_e3 has no activation and is not returned,
    # so tanh(z @ w_d1 + b_d1) == tanh(h @ (w_e3 @ w_d1) + (b_e3 @ w_d1 + b_d1)).
    h = jnp.tanh(jnp.dot(h, w_mid[...],
                         preferred_element_type=jnp.float32) + b_mid[...])

    # ----- decode -----
    # dec2 (f32, tiny)
    h = jnp.tanh(jnp.dot(h, w_d2[...],
                         preferred_element_type=jnp.float32) + b_d2[...])
    # dec3: bf16 weights, f32 accumulate + bias, no activation.
    y = jnp.dot(h.astype(jnp.bfloat16), w_d3[...],
                preferred_element_type=jnp.float32) + b_d3[...]

    o_ref[...] = y.astype(o_ref.dtype)                        # bf16 store


def prepare_kernel_params(params):
    """Fold enc3/dec1 and cast the two big weights to bf16 (done once, outside
    the kernel)."""
    (w_e1, b_e1, w_e2, b_e2, w_e3, b_e3,
     w_d1, b_d1, w_d2, b_d2, w_d3, b_d3) = params
    w_mid = w_e3 @ w_d1                       # (16, 16), f32
    b_mid = b_e3 @ w_d1 + b_d1                # (1, 16), f32
    return (w_e1.astype(jnp.bfloat16), b_e1,
            w_e2, b_e2,
            w_mid, b_mid,
            w_d2, b_d2,
            w_d3.astype(jnp.bfloat16), b_d3)


def _preferred_tile_b():
    """256-row tiles fill v6e/v7x's 256-wide MXU; 128 already fills v5e's."""
    try:
        kind = jax.devices()[0].device_kind.lower()
    except Exception:
        return 128
    if "v6" in kind or "v7" in kind:
        return 256
    return 128


def _pick_tile_b(B):
    tile = _preferred_tile_b()
    # Keep >= 2 grid steps (v7x megacore 'parallel' sharding needs both TCs
    # busy) and prefer a tile that divides B so the boundary block is full.
    if tile == 256 and (B % 256 != 0 or B // 256 < 2):
        tile = 128
    return tile


def vae_forward(x, kernel_params, *, tile_b=None):
    (w_e1, b_e1, w_e2, b_e2, w_mid, b_mid,
     w_d2, b_d2, w_d3, b_d3) = kernel_params

    B = x.shape[0]
    if tile_b is None:
        tile_b = _pick_tile_b(B)
    n_tiles = pl.cdiv(B, tile_b)   # boundary block (if any) is masked by Pallas;
                                   # no host-side jnp.pad / extra HBM copies.

    act_in_spec = pl.BlockSpec((tile_b, INTENSITY_COUNT), lambda i: (i, 0))
    act_out_spec = pl.BlockSpec((tile_b, INTENSITY_COUNT), lambda i: (i, 0))

    def resident(arr):
        # Full-array block, same block index every grid step -> stays in VMEM.
        return pl.BlockSpec(arr.shape, lambda i: (0, 0))

    out = pl.pallas_call(
        vae_kernel,
        out_shape=jax.ShapeDtypeStruct((B, INTENSITY_COUNT), jnp.bfloat16),
        grid=(n_tiles,),
        in_specs=[act_in_spec,
                  resident(w_e1), resident(b_e1),
                  resident(w_e2), resident(b_e2),
                  resident(w_mid), resident(b_mid),
                  resident(w_d2), resident(b_d2),
                  resident(w_d3), resident(b_d3)],
        out_specs=act_out_spec,
        compiler_params=pltpu.CompilerParams(
            dimension_semantics=("parallel",),        # megacore-shard on v7x
            vmem_limit_bytes=32 * 1024 * 1024),
    )(x, w_e1, b_e1, w_e2, b_e2, w_mid, b_mid, w_d2, b_d2, w_d3, b_d3)

    return out


def init_linear(key, fan_in, fan_out):
    """PyTorch nn.Linear-style uniform(-1/sqrt(fan_in), 1/sqrt(fan_in)) init.

    Weight returned as [fan_in, fan_out] (already transposed for x @ W)."""
    kw, kb = jax.random.split(key)
    bound = 1.0 / jnp.sqrt(jnp.float32(fan_in))
    w = jax.random.uniform(kw, (fan_in, fan_out), jnp.float32, -bound, bound)
    b = jax.random.uniform(kb, (1, fan_out), jnp.float32, -bound, bound)
    return w, b


def init_params(key):
    dims = [
        (INTENSITY_COUNT, H1),   # enc1
        (H1, H2),                # enc2
        (H2, LATENT_SIZE),       # enc3
        (LATENT_SIZE, H2),       # dec1
        (H2, H1),                # dec2
        (H1, INTENSITY_COUNT),   # dec3
    ]
    keys = jax.random.split(key, len(dims))
    params = []
    for k, (fi, fo) in zip(keys, dims):
        w, b = init_linear(k, fi, fo)
        params.extend([w, b])
    return tuple(params)


def vae_reference(x, params):
    """Exact f32 reference of the original module (no fusion, no bf16)."""
    (w_e1, b_e1, w_e2, b_e2, w_e3, b_e3,
     w_d1, b_d1, w_d2, b_d2, w_d3, b_d3) = params
    h = jnp.tanh(x @ w_e1 + b_e1)
    h = jnp.tanh(h @ w_e2 + b_e2)
    z = h @ w_e3 + b_e3
    h = jnp.tanh(z @ w_d1 + b_d1)
    h = jnp.tanh(h @ w_d2 + b_d2)
    return h @ w_d3 + b_d3


if __name__ == "__main__":
    key = jax.random.PRNGKey(0)
    k_params, k_x = jax.random.split(key)
    params = init_params(k_params)
    kernel_params = prepare_kernel_params(params)

    # Producer supplies bf16 activations (contract change recommended by the
    # perf review: halves input HBM traffic in a bandwidth-bound kernel).
    x = jax.random.normal(
        k_x, (BATCH, INTENSITY_COUNT), jnp.float32).astype(jnp.bfloat16)

    out = vae_forward(x, kernel_params)
    out = jax.block_until_ready(out)

    ref = vae_reference(x.astype(jnp.float32), params)
    assert out.shape == (BATCH, INTENSITY_COUNT)
    assert out.dtype == jnp.bfloat16
    # Tolerance reflects bf16 weights for enc1/dec3, bf16 activation input and
    # bf16 output storage; internal accumulation/tanh remain f32.
    err = float(jnp.max(jnp.abs(out.astype(jnp.float32) - ref)))
    assert jnp.allclose(out.astype(jnp.float32), ref, atol=3e-2, rtol=3e-2), err

    print("KERNEL_OK")
</pallas_src>

<mosaic_0001>
module attributes {stable_mosaic.version = 11 : i64} {
  func.func @vae_kernel(%arg0: i32, %arg1: memref<128x1024xbf16, #tpu.memory_space<vmem>>, %arg2: memref<1024x128xbf16, #tpu.memory_space<vmem>>, %arg3: memref<1x128xf32, #tpu.memory_space<vmem>>, %arg4: memref<128x16xf32, #tpu.memory_space<vmem>>, %arg5: memref<1x16xf32, #tpu.memory_space<vmem>>, %arg6: memref<16x16xf32, #tpu.memory_space<vmem>>, %arg7: memref<1x16xf32, #tpu.memory_space<vmem>>, %arg8: memref<16x128xf32, #tpu.memory_space<vmem>>, %arg9: memref<1x128xf32, #tpu.memory_space<vmem>>, %arg10: memref<128x1024xbf16, #tpu.memory_space<vmem>>, %arg11: memref<1x1024xf32, #tpu.memory_space<vmem>>, %arg12: memref<128x1024xbf16, #tpu.memory_space<vmem>>) attributes {dimension_semantics = [#tpu.dimension_semantics<parallel>], iteration_bounds = array<i64: 8>, scalar_prefetch = 0 : i64, scratch_operands = 0 : i64, tpu.core_type = #tpu.core_type<tc>, window_params = [{transform_indices = @transform_0, window_bounds = array<i64: 128, 1024>}, {pipeline_mode = #tpu.pipeline_mode<synchronous>, transform_indices = @transform_1, window_bounds = array<i64: 1024, 128>}, {pipeline_mode = #tpu.pipeline_mode<synchronous>, transform_indices = @transform_2, window_bounds = array<i64: 1, 128>}, {pipeline_mode = #tpu.pipeline_mode<synchronous>, transform_indices = @transform_3, window_bounds = array<i64: 128, 16>}, {pipeline_mode = #tpu.pipeline_mode<synchronous>, transform_indices = @transform_4, window_bounds = array<i64: 1, 16>}, {pipeline_mode = #tpu.pipeline_mode<synchronous>, transform_indices = @transform_5, window_bounds = array<i64: 16, 16>}, {pipeline_mode = #tpu.pipeline_mode<synchronous>, transform_indices = @transform_6, window_bounds = array<i64: 1, 16>}, {pipeline_mode = #tpu.pipeline_mode<synchronous>, transform_indices = @transform_7, window_bounds = array<i64: 16, 128>}, {pipeline_mode = #tpu.pipeline_mode<synchronous>, transform_indices = @transform_8, window_bounds = array<i64: 1, 128>}, {pipeline_mode = #tpu.pipeline_mode<synchronous>, transform_indices = @transform_9, window_bounds = array<i64: 128, 1024>}, {pipeline_mode = #tpu.pipeline_mode<synchronous>, transform_indices = @transform_10, window_bounds = array<i64: 1, 1024>}, {transform_indices = @transform_11, window_bounds = array<i64: 128, 1024>}]} {
    %c0 = arith.constant 0 : index
    %c0_0 = arith.constant 0 : index
    %0 = vector.load %arg1[%c0, %c0_0] : memref<128x1024xbf16, #tpu.memory_space<vmem>>, vector<128x1024xbf16>
    %c0_1 = arith.constant 0 : index
    %c0_2 = arith.constant 0 : index
    %1 = vector.load %arg2[%c0_1, %c0_2] : memref<1024x128xbf16, #tpu.memory_space<vmem>>, vector<1024x128xbf16>
    %cst = arith.constant dense<0.000000e+00> : vector<128x128xf32>
    %2 = tpu.matmul %0, %1, %cst {dimension_numbers = #tpu.dot_dimension_numbers<[1], [0], [0], [1], [0, 0, 1, 1], [], []>} : vector<128x1024xbf16>, vector<1024x128xbf16>, vector<128x128xf32> -> vector<128x128xf32>
    %c0_3 = arith.constant 0 : index
    %c0_4 = arith.constant 0 : index
    %3 = vector.load %arg3[%c0_3, %c0_4] : memref<1x128xf32, #tpu.memory_space<vmem>>, vector<1x128xf32>
    %4 = vector.broadcast %3 : vector<1x128xf32> to vector<128x128xf32>
    %5 = arith.addf %2, %4 : vector<128x128xf32>
    %6 = math.tanh %5 : vector<128x128xf32>
    %c0_5 = arith.constant 0 : index
    %c0_6 = arith.constant 0 : index
    %7 = vector.load %arg4[%c0_5, %c0_6] : memref<128x16xf32, #tpu.memory_space<vmem>>, vector<128x16xf32>
    %cst_7 = arith.constant dense<0.000000e+00> : vector<128x16xf32>
    %8 = tpu.matmul %6, %7, %cst_7 {dimension_numbers = #tpu.dot_dimension_numbers<[1], [0], [0], [1], [0, 0, 1, 1], [], []>} : vector<128x128xf32>, vector<128x16xf32>, vector<128x16xf32> -> vector<128x16xf32>
    %c0_8 = arith.constant 0 : index
    %c0_9 = arith.constant 0 : index
    %9 = vector.load %arg5[%c0_8, %c0_9] : memref<1x16xf32, #tpu.memory_space<vmem>>, vector<1x16xf32>
    %10 = vector.broadcast %9 : vector<1x16xf32> to vector<128x16xf32>
    %11 = arith.addf %8, %10 : vector<128x16xf32>
    %12 = math.tanh %11 : vector<128x16xf32>
    %c0_10 = arith.constant 0 : index
    %c0_11 = arith.constant 0 : index
    %13 = vector.load %arg6[%c0_10, %c0_11] : memref<16x16xf32, #tpu.memory_space<vmem>>, vector<16x16xf32>
    %cst_12 = arith.constant dense<0.000000e+00> : vector<128x16xf32>
    %14 = tpu.matmul %12, %13, %cst_12 {dimension_numbers = #tpu.dot_dimension_numbers<[1], [0], [0], [1], [0, 0, 1, 1], [], []>} : vector<128x16xf32>, vector<16x16xf32>, vector<128x16xf32> -> vector<128x16xf32>
    %c0_13 = arith.constant 0 : index
    %c0_14 = arith.constant 0 : index
    %15 = vector.load %arg7[%c0_13, %c0_14] : memref<1x16xf32, #tpu.memory_space<vmem>>, vector<1x16xf32>
    %16 = vector.broadcast %15 : vector<1x16xf32> to vector<128x16xf32>
    %17 = arith.addf %14, %16 : vector<128x16xf32>
    %18 = math.tanh %17 : vector<128x16xf32>
    %c0_15 = arith.constant 0 : index
    %c0_16 = arith.constant 0 : index
    %19 = vector.load %arg8[%c0_15, %c0_16] : memref<16x128xf32, #tpu.memory_space<vmem>>, vector<16x128xf32>
    %cst_17 = arith.constant dense<0.000000e+00> : vector<128x128xf32>
    %20 = tpu.matmul %18, %19, %cst_17 {dimension_numbers = #tpu.dot_dimension_numbers<[1], [0], [0], [1], [0, 0, 1, 1], [], []>} : vector<128x16xf32>, vector<16x128xf32>, vector<128x128xf32> -> vector<128x128xf32>
    %c0_18 = arith.constant 0 : index
    %c0_19 = arith.constant 0 : index
    %21 = vector.load %arg9[%c0_18, %c0_19] : memref<1x128xf32, #tpu.memory_space<vmem>>, vector<1x128xf32>
    %22 = vector.broadcast %21 : vector<1x128xf32> to vector<128x128xf32>
    %23 = arith.addf %20, %22 : vector<128x128xf32>
    %24 = math.tanh %23 : vector<128x128xf32>
    %25 = arith.truncf %24 : vector<128x128xf32> to vector<128x128xbf16>
    %c0_20 = arith.constant 0 : index
    %c0_21 = arith.constant 0 : index
    %26 = vector.load %arg10[%c0_20, %c0_21] : memref<128x1024xbf16, #tpu.memory_space<vmem>>, vector<128x1024xbf16>
    %cst_22 = arith.constant dense<0.000000e+00> : vector<128x1024xf32>
    %27 = tpu.matmul %25, %26, %cst_22 {dimension_numbers = #tpu.dot_dimension_numbers<[1], [0], [0], [1], [0, 0, 1, 1], [], []>} : vector<128x128xbf16>, vector<128x1024xbf16>, vector<128x1024xf32> -> vector<128x1024xf32>
    %c0_23 = arith.constant 0 : index
    %c0_24 = arith.constant 0 : index
    %28 = vector.load %arg11[%c0_23, %c0_24] : memref<1x1024xf32, #tpu.memory_space<vmem>>, vector<1x1024xf32>
    %29 = vector.broadcast %28 : vector<1x1024xf32> to vector<128x1024xf32>
    %30 = arith.addf %27, %29 : vector<128x1024xf32>
    %31 = arith.truncf %30 : vector<128x1024xf32> to vector<128x1024xbf16>
    %c0_25 = arith.constant 0 : index
    %c0_26 = arith.constant 0 : index
    %32 = vector.load %arg12[%c0_25, %c0_26] : memref<128x1024xbf16, #tpu.memory_space<vmem>>, vector<128x1024xbf16>
    tpu.vector_store %arg12[%c0_25, %c0_26], %31 {strides = array<i32>} : memref<128x1024xbf16, #tpu.memory_space<vmem>>, vector<128x1024xbf16>,
    return
  }
  func.func @transform_0(%arg0: i32) -> (i32, i32) {
    %c0_i32 = arith.constant 0 : i32
    %c0_i32_0 = arith.constant 0 : i32
    return %arg0, %c0_i32 : i32, i32
  }
  func.func @transform_1(%arg0: i32) -> (i32, i32) {
    %c0_i32 = arith.constant 0 : i32
    %c0_i32_0 = arith.constant 0 : i32
    %c0_i32_1 = arith.constant 0 : i32
    return %c0_i32, %c0_i32_0 : i32, i32
  }
  func.func @transform_2(%arg0: i32) -> (i32, i32) {
    %c0_i32 = arith.constant 0 : i32
    %c0_i32_0 = arith.constant 0 : i32
    %c0_i32_1 = arith.constant 0 : i32
    return %c0_i32, %c0_i32_0 : i32, i32
  }
  func.func @transform_3(%arg0: i32) -> (i32, i32) {
    %c0_i32 = arith.constant 0 : i32
    %c0_i32_0 = arith.constant 0 : i32
    %c0_i32_1 = arith.constant 0 : i32
    return %c0_i32, %c0_i32_0 : i32, i32
  }
  func.func @transform_4(%arg0: i32) -> (i32, i32) {
    %c0_i32 = arith.constant 0 : i32
    %c0_i32_0 = arith.constant 0 : i32
    %c0_i32_1 = arith.constant 0 : i32
    return %c0_i32, %c0_i32_0 : i32, i32
  }
  func.func @transform_5(%arg0: i32) -> (i32, i32) {
    %c0_i32 = arith.constant 0 : i32
    %c0_i32_0 = arith.constant 0 : i32
    %c0_i32_1 = arith.constant 0 : i32
    return %c0_i32, %c0_i32_0 : i32, i32
  }
  func.func @transform_6(%arg0: i32) -> (i32, i32) {
    %c0_i32 = arith.constant 0 : i32
    %c0_i32_0 = arith.constant 0 : i32
    %c0_i32_1 = arith.constant 0 : i32
    return %c0_i32, %c0_i32_0 : i32, i32
  }
  func.func @transform_7(%arg0: i32) -> (i32, i32) {
    %c0_i32 = arith.constant 0 : i32
    %c0_i32_0 = arith.constant 0 : i32
    %c0_i32_1 = arith.constant 0 : i32
    return %c0_i32, %c0_i32_0 : i32, i32
  }
  func.func @transform_8(%arg0: i32) -> (i32, i32) {
    %c0_i32 = arith.constant 0 : i32
    %c0_i32_0 = arith.constant 0 : i32
    %c0_i32_1 = arith.constant 0 : i32
    return %c0_i32, %c0_i32_0 : i32, i32
  }
  func.func @transform_9(%arg0: i32) -> (i32, i32) {
    %c0_i32 = arith.constant 0 : i32
    %c0_i32_0 = arith.constant 0 : i32
    %c0_i32_1 = arith.constant 0 : i32
    return %c0_i32, %c0_i32_0 : i32, i32
  }
  func.func @transform_10(%arg0: i32) -> (i32, i32) {
    %c0_i32 = arith.constant 0 : i32
    %c0_i32_0 = arith.constant 0 : i32
    %c0_i32_1 = arith.constant 0 : i32
    return %c0_i32, %c0_i32_0 : i32, i32
  }
  func.func @transform_11(%arg0: i32) -> (i32, i32) {
    %c0_i32 = arith.constant 0 : i32
    %c0_i32_0 = arith.constant 0 : i32
    return %arg0, %c0_i32 : i32, i32
  }
}

</mosaic_0001>

<bundles_post_ra>
// kernel: tpu_custom_call.1
= control target key start
LH: loop header
LB: loop body
LE: loop exit
PB: predicated region body
PF: predicated region fallthrough
CT: control target
= control target key end

     0   :  { %s6096_s0 = inlined_call_operand.hbm [shape: bf16[1024,1024], index: 0, kind: input, shape index: {}]   ;;  %s6097_s1 = inlined_call_operand.hbm [shape: bf16[1024,128], index: 1, kind: input, shape index: {}]   ;;  %s6098_s2 = inlined_call_operand.hbm [shape: f32[1,128], index: 2, kind: input, shape index: {}]   ;;  %s6099_s3 = inlined_call_operand.vmem [shape: f32[128,16], index: 3, kind: input, shape index: {}]   ;;  %s6100_s4 = inlined_call_operand.hbm [shape: f32[1,16], index: 4, kind: input, shape index: {}]   ;;  %s6101_s5 = inlined_call_operand.hbm [shape: f32[16,16], index: 5, kind: input, shape index: {}]   ;;  %s6102_s6 = inlined_call_operand.hbm [shape: f32[1,16], index: 6, kind: input, shape index: {}]   ;;  %s6103_s7 = inlined_call_operand.hbm [shape: f32[16,128], index: 7, kind: input, shape index: {}]   ;;  %s6104_s8 = inlined_call_operand.hbm [shape: f32[1,128], index: 8, kind: input, shape index: {}]   ;;  %s6105_s9 = inlined_call_operand.hbm [shape: bf16[128,1024], index: 9, kind: input, shape index: {}]   ;;  %s6106_s10 = inlined_call_operand.hbm [shape: f32[1,1024], index: 10, kind: input, shape index: {}]   ;;  %s6107_s11 = inlined_call_operand.hbm [shape: bf16[1024,1024], index: 11, kind: output, shape index: {}]  }
   0x1   :  { %6111 = sst [smem:[#allocation27_spill]] %s6097_s1 }
   0x2   :  { %6112 = sst [smem:[#allocation28_spill]] %s6098_s2 }
   0x3   :  { %6113 = sst [smem:[#allocation29_spill]] %s6100_s4 }
   0x4   :  { %6114 = sst [smem:[#allocation30_spill]] %s6102_s6 }
   0x5   :  { %6115 = sst [smem:[#allocation31_spill]] %s6107_s11 }
   0x6   :  { %16 = vsyncpa [#allocation3], 0 }
   0x7   :  { %18 = vsyncpa [#allocation3 + $0x1], 0 }
   0x8   :  { %19 = vsyncpa [#allocation6], 0 }
   0x9   :  { %20 = vsyncpa [#allocation9], 0 }
   0xa   :  { %21 = vsyncpa [#allocation12], 0 }
   0xb   :  { %22 = vsyncpa [#allocation15], 0 }
   0xc   :  { %23 = vsyncpa [#allocation18], 0 }
   0xd   :  { %24 = vsyncpa [#allocation4], 0 }
   0xe   :  { %26 = vsyncpa [#allocation4 + $0x1], 0  ;;  %s5131_s17 = smov 0   ;;  %s5133_s18 = smov 0  }
   0xf   :  { %s5135_s19 = smov 0   ;;  %s5137_s20 = smov 0  }
  0x10 LB: > { %s6116_s1 = sld [smem:[#allocation27_spill]]  ;;  %s5155_s24 = sadd.s32 4294967295, %s5052_s20   ;;  %s5052_s20 = sphi %s5137_s20, %s6132_s20   ;;  %s5048_s19 = sphi %s5135_s19, %s6131_s19   ;;  %s5044_s18 = sphi %s5133_s18, %s6130_s18   ;;  %s5040_s17 = sphi %s5131_s17, %s6129_s17  }
  0x11   : > { %p3336_p0 = scmp.ge.s32.totalorder %s5052_s20, 1  ;;  %p53_p1 = scmp.eq.s32.totalorder %s5155_s24, 0 }
  0x12   : > { %p299_p2 = scmp.lt.s32.totalorder %s5052_s20, 9  ;;  %s5054_s26 = smov [#allocation5]  }
  0x13   : > { %s312_s27 = sshll.u32 %s5054_s26, 4  ;;  %s6118_s4 = sld [smem:[#allocation29_spill]]  ;;  %s313_s27 = int_to_ptr.vmem [resolvable:$true] %s312_s27 }
  0x14   : > { %p5160_p3 = pnand %p3336_p0, %p299_p2  ;;  %s6120_s6 = sld [smem:[#allocation30_spill]] }
  0x15   : > { %s5055_s16 = smov [#allocation8]   ;;  %s5056_s22 = smov 64  }
  0x16   : > { %s310_s23 = sshll.u32 %s6116_s1, 4  ;;  %p4429_p4 = pneg %p5160_p3  ;;  %s311_s23 = int_to_ptr.hbm [resolvable:$true] %s310_s23 }
  0x17   : > { %s342_s21 = sshll.u32 %s5055_s16, 4  ;;  %s5057_s26 = smov 4   ;;  %s343_s21 = int_to_ptr.vmem [resolvable:$true] %s342_s21 }
  0x18   : > { %p5171_p5 = pnand %p4429_p4, %p53_p1  ;;  %s392_s1 = sshll.u32 %s6104_s8, 4  ;;  %s393_s1 = int_to_ptr.hbm [resolvable:$true] %s392_s1 }
  0x19   : > { %s340_s30 = sshll.u32 %s6118_s4, 4  ;;  %s5058_s4 = smov [#allocation11]   ;;  %s341_s30 = int_to_ptr.hbm [resolvable:$true] %s340_s30 }
  0x1a   : > { %s366_s15 = sshll.u32 %s6120_s6, 4  ;;  %s368_s11 = sshll.u32 %s5058_s4, 4  ;;  %s367_s15 = int_to_ptr.hbm [resolvable:$true] %s366_s15  ;;  %s369_s11 = int_to_ptr.vmem [resolvable:$true] %s368_s11 }
  0x1b   : > { %4432 = dma.hbm_to_vmem [thread:$0]  (!%p5171_p5), %s311_s23, 8192, %s313_s27, [#allocation6], %s5056_s22, %s5056_s22, %s5057_s26  }
  0x1c   : > { %4438 = dma.hbm_to_vmem [thread:$0]  (!%p5171_p5), %s341_s30, 16, %s343_s21, [#allocation9]  }
  0x1d   : > { %4444 = dma.hbm_to_vmem [thread:$0]  (!%p5171_p5), %s367_s15, 16, %s369_s11, [#allocation12]  }
  0x1e   : > { %s5059_s13 = smov [#allocation14]   ;;  %s6121_s2 = sld [smem:[#allocation28_spill]] }
  0x1f   : > { %s394_s14 = sshll.u32 %s5059_s13, 4  ;;  %s351_s21 = sshll.u32 %s6101_s5, 4  ;;  %s395_s14 = int_to_ptr.vmem [resolvable:$true] %s394_s14  ;;  %s352_s21 = int_to_ptr.hbm [resolvable:$true] %s351_s21 }
  0x20   : > { %4450 = dma.hbm_to_vmem [thread:$0]  (!%p5171_p5), %s393_s1, 16, %s395_s14, [#allocation15]  }
  0x21   : > { %s5060_s4 = smov [#allocation7]   ;;  %s5061_s11 = smov [#allocation10]  }
  0x22   : > { %s327_s22 = sshll.u32 %s5060_s4, 4  ;;  %s353_s15 = sshll.u32 %s5061_s11, 4  ;;  %s328_s22 = int_to_ptr.vmem [resolvable:$true] %s327_s22  ;;  %s354_s15 = int_to_ptr.vmem [resolvable:$true] %s353_s15 }
  0x23   : > { %s5062_s6 = smov 128   ;;  %s5063_s26 = smov 8  }
  0x24   : > { %s325_s23 = sshll.u32 %s6121_s2, 4  ;;  %s377_s29 = sshll.u32 %s6103_s7, 4  ;;  %s326_s23 = int_to_ptr.hbm [resolvable:$true] %s325_s23  ;;  %s378_s29 = int_to_ptr.hbm [resolvable:$true] %s377_s29 }
  0x25   : > { %4435 = dma.hbm_to_vmem [thread:$0]  (!%p5171_p5), %s326_s23, 16, %s328_s22, [#allocation6]  }
  0x26   : > { %4441 = dma.hbm_to_vmem [thread:$0]  (!%p5171_p5), %s352_s21, 256, %s354_s15, [#allocation9], %s5062_s6, %s5062_s6, %s5063_s26  }
  0x27   : > { %s5064_s13 = smov [#allocation13]   ;;  %s403_s23 = sshll.u32 %s6105_s9, 4  ;;  %s404_s23 = int_to_ptr.hbm [resolvable:$true] %s403_s23 }
  0x28   : > { %s379_s14 = sshll.u32 %s5064_s13, 4  ;;  %s5065_s30 = smov [#allocation16]   ;;  %s380_s14 = int_to_ptr.vmem [resolvable:$true] %s379_s14 }
  0x29   : > { %4447 = dma.hbm_to_vmem [thread:$0]  (!%p5171_p5), %s378_s29, 256, %s380_s14, [#allocation12], %s5062_s6, %s5062_s6, %s5063_s26  }
  0x2a   : > { %s405_s21 = sshll.u32 %s5065_s30, 4  ;;  %s6109_s4 = smov 512   ;;  %s406_s21 = int_to_ptr.vmem [resolvable:$true] %s405_s21 }
  0x2b   : > { %s6110_s22 = smov 32   ;;  %s418_s6 = sshll.u32 %s6106_s10, 4  ;;  %s419_s6 = int_to_ptr.hbm [resolvable:$true] %s418_s6 }
  0x2c   : > { %4453 = dma.hbm_to_vmem [thread:$0]  (!%p5171_p5), %s404_s23, 8192, %s406_s21, [#allocation15], %s6109_s4, %s6109_s4, %s6110_s22  }
  0x2d   : > { %s5068_s26 = smov [#allocation17]   ;;  %s3335_s28 = sadd.s32 4294967294, %s5052_s20  }
  0x2e   : > { %s420_s1 = sshll.u32 %s5068_s26, 4  ;;  %s5219_s29 = sadd.s32 1, %s5052_s20   ;;  %s421_s1 = int_to_ptr.vmem [resolvable:$true] %s420_s1 }
  0x2f   : > { %4456 = dma.hbm_to_vmem [thread:$0]  (!%p5171_p5), %s419_s6, 128, %s421_s1, [#allocation18]  }
  0x30   : > { %s39_s13 = sadd.s32 1, %s5048_s19  ;;  %s36_s14 = ssub.s32 %s5052_s20, %s5219_s29 }
  0x31   : > { %p46_p6 = scmp.ne.s32.totalorder %s5048_s19, %s5044_s18  ;;  %p37_p7 = scmp.eq.s32.totalorder %s36_s14, 0 }
  0x32   : > { %p47_p8 = scmp.eq.s32.totalorder %s5052_s20, 0  ;;  %p52_p9 = scmp.ne.s32.totalorder %s5044_s18, %s5040_s17 }
  0x33   : > { %p286_p10 = scmp.eq.s32.totalorder %s5155_s24, 7  ;;  %p292_p13 = scmp.eq.s32.totalorder %s3335_s28, 7 }
  0x34   : > { %s5231_s16 = scalar_select %p37_p7, %s5048_s19, %s39_s13  }
  0x35   : > { %p5235_p11 = por %p53_p1, %p52_p9  ;;  %p5239_p12 = por %p286_p10, %p46_p6 }
  0x36   : > { %p48_p0 = por %p47_p8, %p46_p6  ;;  %s431_s23 = sand.u32 1, %s5048_s19  }
  0x37   : > { %p5244_p2 = por %p292_p13, %p52_p9  ;;  %p4474_p4 = scmp.lt.s32.totalorder %s5052_s20, 8 }
  0x38   : > { %s3347_s21 = sshll.u32 %s431_s23, 9  ;;  %s4170_s11 = sshll.u32 %s5052_s20, 9 }
  0x39   : > { %s441_s26 = scalar_lea.hbm %s6096_s0, %s4170_s11  ;;  %s435_s13 = scalar_lea.vmem [#allocation2], %s3347_s21 }
  0x3a   : > { %s442_s1 = sshll.u32 %s441_s26, 4  ;;  %s444_s14 = sshll.u32 %s435_s13, 4  ;;  %s443_s1 = int_to_ptr.hbm [resolvable:$true] %s442_s1  ;;  %s445_s14 = int_to_ptr.vmem [resolvable:$true] %s444_s14 }
  0x3b   : > { %p5253_p5 = pnand %p4474_p4, %p48_p0  ;;  %s432_s4 = scalar_lea.sflag [#allocation3], %s431_s23 }
  0x3c   : > { %s4936_s22 = sshra.s32 %s443_s1, 4  ;;  %s4943_s21 = scalar_lea.hbm %s6096_s0, 4096  ;;  %s4937_s22 = int_to_ptr.hbm [resolvable:$true] %s4936_s22 }
  0x3d   : > { %s4938_s2 = scalar_lea.hbm %s4937_s22, 512  ;;  %p4940_p7 = pneg %p5253_p5 }
  0x3e   : > { %p4939_p6 = scmp.ne.s32.totalorder %s4937_s22, %s4938_s2  ;;  %p4944_p10 = scmp.lt.s32.totalorder %s4937_s22, %s6096_s0 }
  0x3f   : > { %p4945_p13 = scmp.lt.s32.totalorder %s4943_s21, %s4938_s2 }
  0x40   : > { %p4941_p8 = pnand %p4940_p7, %p4939_p6 }
  0x41   : > { %p4946_p0 = por %p4945_p13, %p4944_p10 }
  0x42   : > { %p4942_p9 = pneg %p4941_p8 }
  0x44   : > { %p4947_p4 = pnand %p4946_p0, %p4942_p9 }
  0x46   : > { %4950 = shalt.err (!%p4947_p4)
}
  0x47   : > { %s6126_s23 = smov 32   ;;  %s6127_s13 = smov 512  }
  0x48   : > { %4460 = dma.hbm_to_vmem [thread:$0]  (!%p5253_p5), %s443_s1, 8192, %s445_s14, %s432_s4, %s6127_s13, %s6127_s13, %s6126_s23  }
  0x49   : > { %456 = sbr.rel (%p5160_p3) target bundleno = 1296 (0x510), region = 64  ;;  %s5273_s11 = sand.u32 (!%p5160_p3), 1, %s5044_s18  }
  0x4a   : > { %s3352_s2 = sshll.u32 (!%p5160_p3), %s5273_s11, 9  ;;  %s459_s22 = scalar_lea.sflag (!%p5160_p3), [#allocation3], %s5273_s11 }
  0x4b   : > { %s5279_s15 = scalar_lea.vmem (!%p5160_p3), [#allocation2], %s3352_s2 }
  0x4e   : > { %5011 = dma.done.wait (%p5235_p11), %s459_s22, 8192  }
  0x4f   : > { %5013 = vsyncadd (%p5235_p11), %s459_s22, 4294959104 }
  0x50   : > { %5015 = dma.done.wait (%p53_p1), [#allocation6], 8208  }
  0x51   : > { %5017 = vsyncadd (%p53_p1), [#allocation6], 4294959088 }
  0x52   : > { %5019 = dma.done.wait (%p53_p1), [#allocation9], 272  }
  0x53   : > { %5021 = vsyncadd (%p53_p1), [#allocation9], 4294967024 }
  0x54   : > { %5023 = dma.done.wait (%p53_p1), [#allocation12], 272  }
  0x55   : > { %5025 = vsyncadd (%p53_p1), [#allocation12], 4294967024 }
  0x56   : > { %5027 = dma.done.wait (%p53_p1), [#allocation15], 8208  }
  0x57   : > { %5029 = vsyncadd (%p53_p1), [#allocation15], 4294959088 }
  0x58   : > { %5031 = dma.done.wait (%p53_p1), [#allocation18], 128  }
  0x59   : > { %5033 = vsyncadd (%p53_p1), [#allocation18], 4294967168  ;;  %v4242_v0 = vld [vmem:[#allocation5 + $0x38] sm:$0xff]  ;;  %v4241_v3 = vld [vmem:[#allocation5 + $0x30] sm:$0xff]  ;;  %vm1964_vm0 = vcmask 130048   ;;  %s6128_s13 = sld [smem:[#allocation31_spill]] }
  0x5a   : > { %v5305_v1 = vld [vmem:[#allocation5 + $0xb8] sm:$0xff]  ;;  %4365 = vmatpush.bf16.msra.mxu3 %v4242_v0  ;;  %v5310_v4 = vld [vmem:[#allocation5 + $0xb0] sm:$0xff]  ;;  %1449 = vmatpush.bf16.msra.mxu0 %v4242_v0  ;;  %v4240_v6 = vld [vmem:[#allocation5 + $0x28] sm:$0xff] }
  0x5b   : > { %v5307_v2 = vld [vmem:[#allocation5 + $0x78] sm:$0xff]  ;;  %4381 = vmatpush.bf16.msra.mxu2 %v5305_v1  ;;  %v5313_v5 = vld [vmem:[#allocation5 + $0x70] sm:$0xff]  ;;  %v5316_v7 = vld [vmem:[#allocation5 + $0xa8] sm:$0xff] }
  0x5c   : > { %4373 = vmatpush.bf16.msra.mxu1 %v5307_v2  ;;  %v5319_v8 = vld [vmem:[#allocation5 + $0x68] sm:$0xff]  ;;  %v4239_v9 = vld [vmem:[#allocation5 + $0x20] sm:$0xff]  ;;  %v4238_v12 = vld [vmem:[#allocation5 + $0x18] sm:$0xff] }
  0x5d   : > { %v5322_v10 = vld [vmem:[#allocation5 + $0xa0] sm:$0xff]  ;;  %v5328_v13 = vld [vmem:[#allocation5 + $0x98] sm:$0xff]  ;;  %v4237_v15 = vld [vmem:[#allocation5 + $0x10] sm:$0xff] }
  0x5e   : > { %4366 = vmatpush.bf16.msra.mxu3 %v4241_v3  ;;  %1450 = vmatpush.bf16.msra.mxu0 %v4241_v3  ;;  %v5325_v11 = vld [vmem:[#allocation5 + $0x60] sm:$0xff]  ;;  %v5331_v14 = vld [vmem:[#allocation5 + $0x58] sm:$0xff]  ;;  %v5334_v16 = vld [vmem:[#allocation5 + $0x90] sm:$0xff] }
  0x5f   : > { %4382 = vmatpush.bf16.msra.mxu2 %v5310_v4  ;;  %v5337_v17 = vld [vmem:[#allocation5 + $0x50] sm:$0xff]  ;;  %v4236_v18 = vld [vmem:[#allocation5 + $0x8] sm:$0xff]  ;;  %v4235_v21 = vld [vmem:[#allocation5] sm:$0xff]  ;;  %s4986_s21 = scalar_lea.hbm %s6128_s13, 4096 }
  0x60   : > { %4374 = vmatpush.bf16.msra.mxu1 %v5313_v5  ;;  %v5340_v19 = vld [vmem:[#allocation5 + $0x88] sm:$0xff]  ;;  %v3429_v22 = vld [vmem:[%s5279_s15 + $0x80] sm:$0xf]  ;;  %v4266_v27 = vld [vmem:[#allocation5 + $0xf8] sm:$0xff] }
  0x61   : > { %v4244_v20 = vld [vmem:[#allocation5 + $0x48] sm:$0xff]  ;;  %v4191_v23 = vld [vmem:[%s5279_s15 + $0x9c] sm:$0xf0]  ;;  %v4187_v31 = vld [vmem:[%s5279_s15 + $0x84] sm:$0xf] }
  0x62   : > { %4367 = vmatpush.bf16.msra.mxu3 %v4240_v6  ;;  %1451 = vmatpush.bf16.msra.mxu0 %v4240_v6  ;;  %v5346_v24 = vld [vmem:[#allocation5 + $0x80] sm:$0xff]  ;;  %v3437_v25 = vld [vmem:[%s5279_s15 + $0x88] sm:$0xf]  ;;  %v3430_v33 = vor.u32 %v4191_v23, %v3429_v22  ;;  %v4265_v37 = vld [vmem:[#allocation5 + $0xf0] sm:$0xff] }
  0x63   : > { %4383 = vmatpush.bf16.msra.mxu2 %v5316_v7  ;;  %v4192_v26 = vld [vmem:[%s5279_s15 + $0xa4] sm:$0xf0]  ;;  %v3365_v28 = vld [vmem:[%s5279_s15] sm:$0xf]  ;;  %v3431_v32 = vld [vmem:[%s5279_s15 + $0xa0] sm:$0xf0] }
  0x64   : > { %4375 = vmatpush.bf16.msra.mxu1 %v5319_v8  ;;  %v4175_v29 = vld [vmem:[%s5279_s15 + $0x1c] sm:$0xf0]  ;;  %v3438_v34 = vor.u32 %v4192_v26, %v3437_v25  ;;  %v3434_v36 = vor.u32 %v4187_v31, %v3431_v32  ;;  %v4264_v38 = vld [vmem:[#allocation5 + $0xe8] sm:$0xff]  ;;  %v4195_v46 = vld [vmem:[%s5279_s15 + $0xc4] sm:$0xf] }
  0x65   : > { %v4243_v30 = vld [vmem:[#allocation5 + $0x40] sm:$0xff]  ;;  %v3366_v35 = vor.u32 %v4175_v29, %v3365_v28  ;;  %v3469_v42 = vld [vmem:[%s5279_s15 + $0xc8] sm:$0xf]  ;;  %v4262_v52 = vld [vmem:[#allocation5 + $0xd8] sm:$0xff] }
  0x66   : > { %4368 = vmatpush.bf16.msra.mxu3 %v4239_v9  ;;  %1452 = vmatpush.bf16.msra.mxu0 %v4239_v9  ;;  %v4263_v39 = vld [vmem:[#allocation5 + $0xe0] sm:$0xff]  ;;  %v4200_v43 = vld [vmem:[%s5279_s15 + $0xe4] sm:$0xf0]  ;;  %v4261_v53 = vld [vmem:[#allocation5 + $0xd0] sm:$0xff] }
  0x67   : > { %4384 = vmatpush.bf16.msra.mxu2 %v5322_v10  ;;  %v3461_v40 = vld [vmem:[%s5279_s15 + $0xc0] sm:$0xf]  ;;  %v3463_v47 = vld [vmem:[%s5279_s15 + $0xe0] sm:$0xf0]  ;;  %v3470_v49 = vor.u32 %v4200_v43, %v3469_v42  ;;  %v3501_v56 = vld [vmem:[%s5279_s15 + $0x108] sm:$0xf] }
  0x68   : > { %4376 = vmatpush.bf16.msra.mxu1 %v5325_v11  ;;  %v4199_v41 = vld [vmem:[%s5279_s15 + $0xdc] sm:$0xf0]  ;;  %v3466_v51 = vor.u32 %v4195_v46, %v3463_v47  ;;  %v4208_v57 = vld [vmem:[%s5279_s15 + $0x124] sm:$0xf0]  ;;  %v4171_v58 = vld [vmem:[%s5279_s15 + $0x4] sm:$0xf] }
  0x69   : > { %v3397_v44 = vld [vmem:[%s5279_s15 + $0x40] sm:$0xf]  ;;  %v3462_v48 = vor.u32 %v4199_v41, %v3461_v40  ;;  %v3367_v59 = vld [vmem:[%s5279_s15 + $0x20] sm:$0xf0]  ;;  %v3502_v63 = vor.u32 %v4208_v57, %v3501_v56  ;;  %v4290_v3 = vld [vmem:[#allocation5 + $0x1b8] sm:$0xff] }
  0x6a   : > { %4369 = vmatpush.bf16.msra.mxu3 %v4238_v12  ;;  %1453 = vmatpush.bf16.msra.mxu0 %v4238_v12  ;;  %v4183_v45 = vld [vmem:[%s5279_s15 + $0x5c] sm:$0xf0]  ;;  %v4203_v60 = vld [vmem:[%s5279_s15 + $0x104] sm:$0xf]  ;;  %v3370_v0 = vor.u32 %v4171_v58, %v3367_v59  ;;  %v4282_v6 = vld [vmem:[#allocation5 + $0x178] sm:$0xff] }
  0x6b   : > { %4385 = vmatpush.bf16.msra.mxu2 %v5328_v13  ;;  %v3398_v50 = vor.u32 %v4183_v45, %v3397_v44  ;;  %v3493_v54 = vld [vmem:[%s5279_s15 + $0x100] sm:$0xf]  ;;  %v3495_v61 = vld [vmem:[%s5279_s15 + $0x120] sm:$0xf0]  ;;  %v4288_v9 = vld [vmem:[#allocation5 + $0x1a8] sm:$0xff] }
  0x6c   : > { %4377 = vmatpush.bf16.msra.mxu1 %v5331_v14  ;;  %v4207_v55 = vld [vmem:[%s5279_s15 + $0x11c] sm:$0xf0]  ;;  %v4274_v28 = vld [vmem:[#allocation5 + $0x138] sm:$0xff]  ;;  %v4285_v31 = vld [vmem:[#allocation5 + $0x190] sm:$0xff] }
  0x6d   : > { %v3494_v62 = vor.u32 %v4207_v55, %v3493_v54  ;;  %v4215_v12 = vld [vmem:[%s5279_s15 + $0x15c] sm:$0xf0]  ;;  %v4278_v29 = vld [vmem:[#allocation5 + $0x158] sm:$0xff]  ;;  %v4284_v42 = vld [vmem:[#allocation5 + $0x188] sm:$0xff] }
  0x6e   : > { %4370 = vmatpush.bf16.msra.mxu3 %v4237_v15  ;;  %1454 = vmatpush.bf16.msra.mxu0 %v4237_v15  ;;  %v4216_v15 = vld [vmem:[%s5279_s15 + $0x164] sm:$0xf0]  ;;  %v4287_v26 = vld [vmem:[#allocation5 + $0x1a0] sm:$0xff]  ;;  %v4269_v58 = vld [vmem:[#allocation5 + $0x110] sm:$0xff] }
  0x6f   : > { %4386 = vmatpush.bf16.msra.mxu2 %v5334_v16  ;;  %v4223_v32 = vld [vmem:[%s5279_s15 + $0x19c] sm:$0xf0]  ;;  %v4272_v44 = vld [vmem:[#allocation5 + $0x128] sm:$0xff]  ;;  %v4227_v56 = vld [vmem:[%s5279_s15 + $0x1c4] sm:$0xf] }
  0x70   : > { %4378 = vmatpush.bf16.msra.mxu1 %v5337_v17  ;;  %v4276_v45 = vld [vmem:[#allocation5 + $0x148] sm:$0xff]  ;;  %v4283_v46 = vld [vmem:[#allocation5 + $0x180] sm:$0xff] }
  0x71   : > { %v4271_v47 = vld [vmem:[#allocation5 + $0x120] sm:$0xff]  ;;  %v3405_v54 = vld [vmem:[%s5279_s15 + $0x48] sm:$0xf] }
  0x72   : > { %4371 = vmatpush.bf16.msra.mxu3 %v4236_v18  ;;  %1455 = vmatpush.bf16.msra.mxu0 %v4236_v18  ;;  %v4211_v18 = vld [vmem:[%s5279_s15 + $0x144] sm:$0xf]  ;;  %v4184_v55 = vld [vmem:[%s5279_s15 + $0x64] sm:$0xf0] }
  0x73   : > { %4387 = vmatpush.bf16.msra.mxu2 %v5340_v19  ;;  %v3591_v57 = vld [vmem:[%s5279_s15 + $0x1e0] sm:$0xf0] }
  0x74   : > { %4379 = vmatpush.bf16.msra.mxu1 %v4244_v20 }
  0x76   : > { %4372 = vmatpush.bf16.msra.mxu3 %v4235_v21  ;;  %1456 = vmatpush.bf16.msra.mxu0 %v4235_v21 }
  0x77   : > { %4388 = vmatpush.bf16.msra.mxu2 %v5346_v24 }
  0x78   : > { %4380 = vmatpush.bf16.msra.mxu1 %v4243_v30 }
  0x79   : > { %1467 = vmatmul.bf16.vlgmr.msra.gmra.mxu3 %v3430_v33  ;;  %1457 = vmatmul.bf16.vlgmr.msra.gmra.mxu0 %v3366_v35  ;;  %v3565_v33 = vld [vmem:[%s5279_s15 + $0x188] sm:$0xf] }
  0x7a   : > { %1596 = vmatpush.bf16.msrb.mxu3 %v4266_v27  ;;  %1498 = vmatpush.bf16.msrb.mxu0 %v5307_v2  ;;  %v3498_v2 = vor.u32 %v4203_v60, %v3495_v61  ;;  %v4259_v27 = vld [vmem:[#allocation5 + $0xc0] sm:$0xff]  ;;  %v3373_v35 = vld [vmem:[%s5279_s15 + $0x8] sm:$0xf]  ;;  %v3406_v61 = vor.u32 %v4184_v55, %v3405_v54  ;;  %v3477_v54 = vld [vmem:[%s5279_s15 + $0xd0] sm:$0xf] }
  0x7b   : > { %1565 = vmatmul.bf16.vlgmr.msra.gmra.mxu2 %v3438_v34  ;;  %1516 = vmatmul.bf16.vlgmr.msra.gmra.mxu1 %v3434_v36  ;;  %v4219_v34 = vld [vmem:[%s5279_s15 + $0x184] sm:$0xf]  ;;  %v4176_v36 = vld [vmem:[%s5279_s15 + $0x24] sm:$0xf0]  ;;  %v4201_v55 = vld [vmem:[%s5279_s15 + $0xec] sm:$0xf0] }
  0x7c   : > { %1743 = vmatpush.bf16.msrb.mxu2 %v4290_v3  ;;  %1694 = vmatpush.bf16.msrb.mxu1 %v4282_v6  ;;  %v3374_v41 = vor.u32 %v4176_v36, %v3373_v35  ;;  %v4172_v3 = vld [vmem:[%s5279_s15 + $0xc] sm:$0xf]  ;;  %v3389_v6 = vld [vmem:[%s5279_s15 + $0x18] sm:$0xf]  ;;  %v4193_v35 = vld [vmem:[%s5279_s15 + $0xac] sm:$0xf0] }
  0x7d   : > { %v4189_v36 = vld [vmem:[%s5279_s15 + $0x94] sm:$0xf] }
  0x7e   : > { %1597 = vmatpush.bf16.msrb.mxu3 %v4265_v37  ;;  %1499 = vmatpush.bf16.msrb.mxu0 %v5313_v5  ;;  %v4260_v5 = vld [vmem:[#allocation5 + $0xc8] sm:$0xff]  ;;  %v3559_v37 = vld [vmem:[%s5279_s15 + $0x1a0] sm:$0xf0] }
  0x7f   : > { %v3562_v43 = vor.u32 %v4219_v34, %v3559_v37  ;;  %v3445_v34 = vld [vmem:[%s5279_s15 + $0x90] sm:$0xf]  ;;  %v3447_v37 = vld [vmem:[%s5279_s15 + $0xb0] sm:$0xf0] }
  0x82   : > { %1598 = vmatpush.bf16.msrb.mxu3 %v4264_v38  ;;  %1500 = vmatpush.bf16.msrb.mxu0 %v5319_v8  ;;  %v4281_v8 = vld [vmem:[#allocation5 + $0x170] sm:$0xff] }
  0x83   : > { %1695 = vmatpush.bf16.msrb.mxu1 %v4281_v8  ;;  %v4273_v38 = vld [vmem:[#allocation5 + $0x130] sm:$0xff] }
  0x84   : > { %v3381_v8 = vld [vmem:[%s5279_s15 + $0x10] sm:$0xf] }
  0x86   : > { %1599 = vmatpush.bf16.msrb.mxu3 %v4263_v39  ;;  %1501 = vmatpush.bf16.msrb.mxu0 %v5325_v11  ;;  %v3525_v11 = vld [vmem:[%s5279_s15 + $0x140] sm:$0xf]  ;;  %v4277_v39 = vld [vmem:[#allocation5 + $0x150] sm:$0xff] }
  0x87   : > { %v3526_v21 = vor.u32 %v4215_v12, %v3525_v11  ;;  %v4173_v11 = vld [vmem:[%s5279_s15 + $0x14] sm:$0xf] }
  0x88   : > { %v3383_v12 = vld [vmem:[%s5279_s15 + $0x30] sm:$0xf0] }
  0x89   : > { %1472 = vmatmul.bf16.gmra.mxu3 %v3462_v48  ;;  %1462 = vmatmul.bf16.gmra.mxu0 %v3398_v50  ;;  %v4275_v48 = vld [vmem:[#allocation5 + $0x140] sm:$0xff] }
  0x8a   : > { %1502 = vmatpush.bf16.msrb.mxu0 %v5331_v14  ;;  %1600 = vmatpush.bf16.msrb.mxu3 %v4262_v52  ;;  %v3533_v14 = vld [vmem:[%s5279_s15 + $0x148] sm:$0xf]  ;;  %v3589_v50 = vld [vmem:[%s5279_s15 + $0x1c0] sm:$0xf] }
  0x8b   : > { %1570 = vmatmul.bf16.gmra.mxu2 %v3470_v49  ;;  %1521 = vmatmul.bf16.gmra.mxu1 %v3466_v51  ;;  %v3534_v22 = vor.u32 %v4216_v15, %v3533_v14  ;;  %v4270_v49 = vld [vmem:[#allocation5 + $0x118] sm:$0xff]  ;;  %v4231_v51 = vld [vmem:[%s5279_s15 + $0x1dc] sm:$0xf0]  ;;  %v3597_v52 = vld [vmem:[%s5279_s15 + $0x1c8] sm:$0xf] }
  0x8c   : > { %v3590_v59 = vor.u32 %v4231_v51, %v3589_v50  ;;  %v4196_v50 = vld [vmem:[%s5279_s15 + $0xcc] sm:$0xf] }
  0x8d   : > { %v3471_v51 = vld [vmem:[%s5279_s15 + $0xe8] sm:$0xf0] }
  0x8e   : > { %1503 = vmatpush.bf16.msrb.mxu0 %v5337_v17  ;;  %1601 = vmatpush.bf16.msrb.mxu3 %v4261_v53  ;;  %v3399_v17 = vld [vmem:[%s5279_s15 + $0x60] sm:$0xf0]  ;;  %v4232_v53 = vld [vmem:[%s5279_s15 + $0x1e4] sm:$0xf0] }
  0x8f   : > { %v3598_v60 = vor.u32 %v4232_v53, %v3597_v52  ;;  %v3485_v52 = vld [vmem:[%s5279_s15 + $0xd8] sm:$0xf] }
  0x90   : > { %v4202_v53 = vld [vmem:[%s5279_s15 + $0xf4] sm:$0xf0] }
  0x92   : > { %1504 = vmatpush.bf16.msrb.mxu0 %v4244_v20  ;;  %1602 = vmatpush.bf16.msrb.mxu3 %v4260_v5  ;;  %v3527_v20 = vld [vmem:[%s5279_s15 + $0x160] sm:$0xf0]  ;;  %v3375_v5 = vld [vmem:[%s5279_s15 + $0x28] sm:$0xf0] }
  0x93   : > { %v3530_v25 = vor.u32 %v4211_v18, %v3527_v20  ;;  %v3378_v14 = vor.u32 %v4172_v3, %v3375_v5  ;;  %v4296_v18 = vld [vmem:[#allocation5 + $0x1e8] sm:$0xff]  ;;  %v4293_v5 = vld [vmem:[#allocation5 + $0x1d0] sm:$0xff] }
  0x94   : > { %v4180_v20 = vld [vmem:[%s5279_s15 + $0x4c] sm:$0xf] }
  0x96   : > { %1505 = vmatpush.bf16.msrb.mxu0 %v4243_v30  ;;  %1603 = vmatpush.bf16.msrb.mxu3 %v4259_v27  ;;  %v3557_v30 = vld [vmem:[%s5279_s15 + $0x180] sm:$0xf]  ;;  %v3415_v27 = vld [vmem:[%s5279_s15 + $0x70] sm:$0xf0] }
  0x99   : > { %1477 = vmatmul.bf16.gmra.mxu3 %v3494_v62  ;;  %1506 = vmatmul.bf16.vlgmr.msrb.gmra.mxu0 %v3370_v0  ;;  %v3594_v62 = vor.u32 %v4227_v56, %v3591_v57  ;;  %v4297_v0 = vld [vmem:[#allocation5 + $0x1f0] sm:$0xff] }
  0x9a   : > { %1547 = vmatpush.bf16.msra.mxu0 %v5305_v1  ;;  %v4289_v1 = vld [vmem:[#allocation5 + $0x1b0] sm:$0xff] }
  0x9b   : > { %1575 = vmatmul.bf16.gmra.mxu2 %v3502_v63  ;;  %1526 = vmatmul.bf16.gmra.mxu1 %v3498_v2  ;;  %v4268_v63 = vld [vmem:[#allocation5 + $0x108] sm:$0xff]  ;;  %v4267_v2 = vld [vmem:[#allocation5 + $0x100] sm:$0xff] }
  0x9c   : > { %1744 = vmatpush.bf16.msrb.mxu2 %v4289_v1  ;;  %v4178_v1 = vld [vmem:[%s5279_s15 + $0x34] sm:$0xf0] }
  0x9d   : > { %v3390_v15 = vor.u32 %v4178_v1, %v3389_v6 }
  0x9e   : > { %1548 = vmatpush.bf16.msra.mxu0 %v5310_v4  ;;  %v4179_v4 = vld [vmem:[%s5279_s15 + $0x44] sm:$0xf] }
  0x9f   : > { %v3402_v23 = vor.u32 %v4179_v4, %v3399_v17  ;;  %v3386_v17 = vor.u32 %v4173_v11, %v3383_v12 }
  0xa0   : > { %1745 = vmatpush.bf16.msrb.mxu2 %v4288_v9  ;;  %v4177_v9 = vld [vmem:[%s5279_s15 + $0x2c] sm:$0xf0] }
  0xa1   : > { %v3382_v4 = vor.u32 %v4177_v9, %v3381_v8 }
  0xa2   : > { %1549 = vmatpush.bf16.msra.mxu0 %v5316_v7  ;;  %v4280_v7 = vld [vmem:[#allocation5 + $0x168] sm:$0xff] }
  0xa3   : > { %1696 = vmatpush.bf16.msrb.mxu1 %v4280_v7  ;;  %v4185_v7 = vld [vmem:[%s5279_s15 + $0x6c] sm:$0xf0] }
  0xa4   : > { %1746 = vmatpush.bf16.msrb.mxu2 %v4287_v26  ;;  %v4181_v26 = vld [vmem:[%s5279_s15 + $0x54] sm:$0xf] }
  0xa6   : > { %1550 = vmatpush.bf16.msra.mxu0 %v5322_v10  ;;  %v4279_v10 = vld [vmem:[#allocation5 + $0x160] sm:$0xff] }
  0xa7   : > { %1697 = vmatpush.bf16.msrb.mxu1 %v4279_v10 }
  0xa9   : > { %1482 = vmatmul.bf16.gmra.mxu3 %v3526_v21  ;;  %1511 = vmatmul.bf16.gmra.mxu0 %v3402_v23  ;;  %v3407_v21 = vld [vmem:[%s5279_s15 + $0x68] sm:$0xf0]  ;;  %v4186_v23 = vld [vmem:[%s5279_s15 + $0x74] sm:$0xf0] }
  0xaa   : > { %1551 = vmatpush.bf16.msra.mxu0 %v5328_v13  ;;  %v4286_v13 = vld [vmem:[#allocation5 + $0x198] sm:$0xff]  ;;  %v3410_v10 = vor.u32 %v4180_v20, %v3407_v21  ;;  %v3509_v20 = vld [vmem:[%s5279_s15 + $0x110] sm:$0xf] }
  0xab   : > { %1580 = vmatmul.bf16.gmra.mxu2 %v3534_v22  ;;  %1531 = vmatmul.bf16.gmra.mxu1 %v3530_v25  ;;  %v3421_v22 = vld [vmem:[%s5279_s15 + $0x58] sm:$0xf]  ;;  %v3413_v25 = vld [vmem:[%s5279_s15 + $0x50] sm:$0xf] }
  0xac   : > { %1747 = vmatpush.bf16.msrb.mxu2 %v4286_v13  ;;  %1698 = vmatpush.bf16.msrb.mxu1 %v4278_v29  ;;  %v3422_v13 = vor.u32 %v4186_v23, %v3421_v22  ;;  %v3418_v29 = vor.u32 %v4181_v26, %v3415_v27  ;;  %v4209_v21 = vld [vmem:[%s5279_s15 + $0x12c] sm:$0xf0] }
  0xae   : > { %1552 = vmatpush.bf16.msra.mxu0 %v5334_v16  ;;  %v4224_v16 = vld [vmem:[%s5279_s15 + $0x1a4] sm:$0xf0] }
  0xaf   : > { %v3566_v40 = vor.u32 %v4224_v16, %v3565_v33  ;;  %v3453_v33 = vld [vmem:[%s5279_s15 + $0x98] sm:$0xf] }
  0xb0   : > { %1748 = vmatpush.bf16.msrb.mxu2 %v4285_v31  ;;  %1699 = vmatpush.bf16.msrb.mxu1 %v4277_v39  ;;  %v4188_v31 = vld [vmem:[%s5279_s15 + $0x8c] sm:$0xf]  ;;  %v4194_v16 = vld [vmem:[%s5279_s15 + $0xb4] sm:$0xf0] }
  0xb1   : > { %v3454_v39 = vor.u32 %v4194_v16, %v3453_v33  ;;  %v4292_v33 = vld [vmem:[#allocation5 + $0x1c8] sm:$0xff] }
  0xb2   : > { %1553 = vmatpush.bf16.msra.mxu0 %v5340_v19  ;;  %v3558_v19 = vor.u32 %v4223_v32, %v3557_v30  ;;  %v4295_v30 = vld [vmem:[#allocation5 + $0x1e0] sm:$0xff]  ;;  %v3439_v32 = vld [vmem:[%s5279_s15 + $0xa8] sm:$0xf0] }
  0xb4   : > { %1749 = vmatpush.bf16.msrb.mxu2 %v4284_v42  ;;  %1700 = vmatpush.bf16.msrb.mxu1 %v4276_v45  ;;  %v5433_v42 = vld [vmem:[#allocation7] ss:$0 sm:$0xff] }
  0xb6   : > { %1554 = vmatpush.bf16.msra.mxu0 %v5346_v24  ;;  %v4298_v24 = vld [vmem:[#allocation5 + $0x1f8] sm:$0xff] }
  0xb7   : > { %1792 = vmatpush.bf16.msra.mxu3 %v4298_v24 }
  0xb8   : > { %1750 = vmatpush.bf16.msrb.mxu2 %v4283_v46  ;;  %1701 = vmatpush.bf16.msrb.mxu1 %v4275_v48 }
  0xb9   : > { %1487 = vmatmul.bf16.gmra.mxu3 %v3558_v19  ;;  %1555 = vmatmul.bf16.vlgmr.msra.gmra.mxu0 %v3374_v41  ;;  %v3446_v19 = vor.u32 %v4193_v35, %v3445_v34  ;;  %v4212_v35 = vld [vmem:[%s5279_s15 + $0x14c] sm:$0xf] }
  0xba   : > { %1645 = vmatpush.bf16.msrb.mxu0 %v4274_v28  ;;  %v3414_v28 = vor.u32 %v4185_v7, %v3413_v25  ;;  %v4205_v25 = vld [vmem:[%s5279_s15 + $0x114] sm:$0xf] }
  0xbb   : > { %1585 = vmatmul.bf16.gmra.mxu2 %v3566_v40  ;;  %1536 = vmatmul.bf16.gmra.mxu1 %v3562_v43  ;;  %v3450_v40 = vor.u32 %v4189_v36, %v3447_v37  ;;  %v4294_v43 = vld [vmem:[#allocation5 + $0x1d8] sm:$0xff]  ;;  %v3511_v7 = vld [vmem:[%s5279_s15 + $0x130] sm:$0xf0]  ;;  %v3535_v36 = vld [vmem:[%s5279_s15 + $0x168] sm:$0xf0] }
  0xbc   : > { %1793 = vmatpush.bf16.msra.mxu3 %v4297_v0  ;;  %v3549_v37 = vld [vmem:[%s5279_s15 + $0x158] sm:$0xf] }
  0xbe   : > { %1646 = vmatpush.bf16.msrb.mxu0 %v4273_v38  ;;  %v3442_v38 = vor.u32 %v4188_v31, %v3439_v32  ;;  %v3514_v31 = vor.u32 %v4205_v25, %v3511_v7  ;;  %v1872_v7 = vld [vmem:[%s6099_s3 + $0x78] sm:$0xff] }
  0xc0   : > { %1794 = vmatpush.bf16.msra.mxu3 %v4296_v18  ;;  %v4210_v18 = vld [vmem:[%s5279_s15 + $0x134] sm:$0xf0] }
  0xc2   : > { %1647 = vmatpush.bf16.msrb.mxu0 %v4272_v44 }
  0xc4   : > { %1795 = vmatpush.bf16.msra.mxu3 %v4295_v30 }
  0xc6   : > { %1648 = vmatpush.bf16.msrb.mxu0 %v4271_v47 }
  0xc8   : > { %1796 = vmatpush.bf16.msra.mxu3 %v4294_v43  ;;  %v3543_v43 = vld [vmem:[%s5279_s15 + $0x170] sm:$0xf0] }
  0xc9   : > { %1492 = vmatmul.bf16.gmra.mxu3 %v3590_v59  ;;  %1560 = vmatmul.bf16.gmra.mxu0 %v3406_v61  ;;  %v3479_v59 = vld [vmem:[%s5279_s15 + $0xf0] sm:$0xf0]  ;;  %v3474_v61 = vor.u32 %v4196_v50, %v3471_v51 }
  0xca   : > { %1649 = vmatpush.bf16.msrb.mxu0 %v4270_v49 }
  0xcb   : > { %1590 = vmatmul.bf16.gmra.mxu2 %v3598_v60  ;;  %1541 = vmatmul.bf16.gmra.mxu1 %v3594_v62  ;;  %v3486_v62 = vor.u32 %v4202_v53, %v3485_v52  ;;  %v4220_v52 = vld [vmem:[%s5279_s15 + $0x18c] sm:$0xf] }
  0xcc   : > { %1797 = vmatpush.bf16.msra.mxu3 %v4293_v5  ;;  %v3567_v53 = vld [vmem:[%s5279_s15 + $0x1a8] sm:$0xf0] }
  0xce   : > { %1650 = vmatpush.bf16.msrb.mxu0 %v4269_v58  ;;  %v4197_v58 = vld [vmem:[%s5279_s15 + $0xd4] sm:$0xf] }
  0xd0   : > { %1798 = vmatpush.bf16.msra.mxu3 %v4292_v33 }
  0xd2   : > { %1651 = vmatpush.bf16.msrb.mxu0 %v4268_v63  ;;  %v3478_v63 = vor.u32 %v4201_v55, %v3477_v54  ;;  %v3581_v54 = vld [vmem:[%s5279_s15 + $0x198] sm:$0xf] }
  0xd3   : > { %v4226_v55 = vld [vmem:[%s5279_s15 + $0x1b4] sm:$0xf0] }
  0xd6   : > { %1652 = vmatpush.bf16.msrb.mxu0 %v4267_v2  ;;  %v3482_v2 = vor.u32 %v4197_v58, %v3479_v59 }
  0xd9   : > { %1604 = vmatmul.bf16.vlgmr.msrb.gmra.mxu3 %v3378_v14  ;;  %1653 = vmatmul.bf16.vlgmr.msrb.gmra.mxu0 %v3382_v4  ;;  %v3503_v4 = vld [vmem:[%s5279_s15 + $0x128] sm:$0xf0] }
  0xda   : > { %1877 = vmatpush.msra.mxu0 %v1872_v7  ;;  %v3487_v7 = vld [vmem:[%s5279_s15 + $0xf8] sm:$0xf0] }
  0xdb   : > { %1751 = vmatmul.bf16.vlgmr.msrb.gmra.mxu2 %v3390_v15  ;;  %1702 = vmatmul.bf16.vlgmr.msrb.gmra.mxu1 %v3386_v17  ;;  %v4204_v15 = vld [vmem:[%s5279_s15 + $0x10c] sm:$0xf]  ;;  %v3517_v17 = vld [vmem:[%s5279_s15 + $0x118] sm:$0xf] }
  0xdc   : > { %v3506_v27 = vor.u32 %v4204_v15, %v3503_v4  ;;  %v3605_v15 = vld [vmem:[%s5279_s15 + $0x1d0] sm:$0xf] }
  0xdd   : > { %v4233_v4 = vld [vmem:[%s5279_s15 + $0x1ec] sm:$0xf0] }
  0xe9   : > { %1609 = vmatmul.bf16.gmra.mxu3 %v3410_v10  ;;  %1658 = vmatmul.bf16.gmra.mxu0 %v3414_v28  ;;  %v3518_v10 = vor.u32 %v4210_v18, %v3517_v17  ;;  %v4229_v18 = vld [vmem:[%s5279_s15 + $0x1d4] sm:$0xf] }
  0xeb   : > { %1756 = vmatmul.bf16.gmra.mxu2 %v3422_v13  ;;  %1707 = vmatmul.bf16.gmra.mxu1 %v3418_v29  ;;  %v3510_v29 = vor.u32 %v4209_v21, %v3509_v20  ;;  %v3607_v20 = vld [vmem:[%s5279_s15 + $0x1f0] sm:$0xf0] }
  0xec   : > { %v3610_v25 = vor.u32 %v4229_v18, %v3607_v20 }
  0xf6   : > { %v5436_v48 = vpop.f32.mrf.mxu0 }
  0xf8   : > { %v1517_v41 = vpop.f32.mrf.mxu1 }
  0xf9   : > { %1614 = vmatmul.bf16.gmra.mxu3 %v3442_v38  ;;  %1663 = vmatmul.bf16.gmra.mxu0 %v3446_v19  ;;  %v4218_v38 = vld [vmem:[%s5279_s15 + $0x174] sm:$0xf0]  ;;  %v4217_v19 = vld [vmem:[%s5279_s15 + $0x16c] sm:$0xf0] }
  0xfb   : > { %1761 = vmatmul.bf16.gmra.mxu2 %v3454_v39  ;;  %1712 = vmatmul.bf16.gmra.mxu1 %v3450_v40  ;;  %v3541_v39 = vld [vmem:[%s5279_s15 + $0x150] sm:$0xf] }
  0xfc   : > { %v1468_v44 = vpop.f32.mrf.mxu3 }
  0xfd   : > { %v1469_v45 = vadd.f32 %v5433_v42, %v1468_v44  ;;  %v3538_v44 = vor.u32 %v4212_v35, %v3535_v36 }
  0xfe   : > { %v1566_v24 = vpop.f32.mrf.mxu2  ;;  %v5451_v1 = vpop.f32.mrf.mxu0 }
  0xff   : > { %v1518_v46 = vadd.f32 %v1517_v41, %v1469_v45  ;;  %v4213_v41 = vld [vmem:[%s5279_s15 + $0x154] sm:$0xf]  ;;  %v3542_v45 = vor.u32 %v4217_v19, %v3541_v39 }
 0x100   : > { %v1519_v47 = vpop.f32.mrf.mxu1 }
 0x101   : > { %v5438_v49 = vadd.f32 %v1566_v24, %v1518_v46  ;;  %v3550_v24 = vor.u32 %v4218_v38, %v3549_v37  ;;  %v3546_v46 = vor.u32 %v4213_v41, %v3543_v43  ;;  %v1870_v37 = vld [vmem:[%s6099_s3 + $0x68] sm:$0xff]  ;;  %v1461_v38 = vadd.f32 %v5433_v42, %v5451_v1 }
 0x104   : > { %v1470_v56 = vpop.f32.mrf.mxu3 }
 0x105   : > { %v1471_v60 = vadd.f32 %v5433_v42, %v1470_v56  ;;  %v3573_v56 = vld [vmem:[%s5279_s15 + $0x190] sm:$0xf] }
 0x106   : > { %v1568_v57 = vpop.f32.mrf.mxu2  ;;  %v5465_v13 = vpop.f32.mrf.mxu0 }
 0x107   : > { %v1520_v0 = vadd.f32 %v1519_v47, %v1471_v60  ;;  %v4291_v47 = vld [vmem:[#allocation5 + $0x1c0] sm:$0xff]  ;;  %v4221_v60 = vld [vmem:[%s5279_s15 + $0x194] sm:$0xf] }
 0x108   : > { %v1522_v6 = vpop.f32.mrf.mxu1  ;;  %1799 = vmatpush.bf16.msra.mxu3 %v4291_v47  ;;  %v3423_v47 = vld [vmem:[%s5279_s15 + $0x78] sm:$0xf0] }
 0x109   : > { %v5449_v3 = vadd.f32 %v1568_v57, %v1520_v0  ;;  %1619 = vmatmul.bf16.gmra.mxu3 %v3474_v61  ;;  %1668 = vmatmul.bf16.gmra.mxu0 %v3478_v63  ;;  %v4225_v57 = vld [vmem:[%s5279_s15 + $0x1ac] sm:$0xf0]  ;;  %v3575_v61 = vld [vmem:[%s5279_s15 + $0x1b0] sm:$0xf0]  ;;  %v3582_v63 = vor.u32 %v4226_v55, %v3581_v54  ;;  %v1868_v55 = vld [vmem:[%s6099_s3 + $0x58] sm:$0xff] }
 0x10a   : > { %v3574_v0 = vor.u32 %v4225_v57, %v3573_v56 }
 0x10b   : > { %1766 = vmatmul.bf16.gmra.mxu2 %v3486_v62  ;;  %1717 = vmatmul.bf16.gmra.mxu1 %v3482_v2  ;;  %v3570_v62 = vor.u32 %v4220_v52, %v3567_v53  ;;  %v3578_v2 = vor.u32 %v4221_v60, %v3575_v61 }
 0x10c   : > { %v1473_v8 = vpop.f32.mrf.mxu3 }
 0x10d   : > { %v1474_v11 = vadd.f32 %v5433_v42, %v1473_v8  ;;  %v4228_v8 = vld [vmem:[%s5279_s15 + $0x1cc] sm:$0xf] }
 0x10e   : > { %v1571_v9 = vpop.f32.mrf.mxu2  ;;  %v5471_v34 = vpop.f32.mrf.mxu0 }
 0x10f   : > { %v1523_v12 = vadd.f32 %v1522_v6, %v1474_v11  ;;  %v3613_v11 = vld [vmem:[%s5279_s15 + $0x1d8] sm:$0xf] }
 0x110   : > { %v1524_v23 = vpop.f32.mrf.mxu1 }
 0x111   : > { %v5454_v14 = vadd.f32 %v1571_v9, %v1523_v12  ;;  %v3599_v9 = vld [vmem:[%s5279_s15 + $0x1e8] sm:$0xf0]  ;;  %v4234_v12 = vld [vmem:[%s5279_s15 + $0x1f4] sm:$0xf0] }
 0x112   : > { %v3602_v21 = vor.u32 %v4228_v8, %v3599_v9  ;;  %v4190_v8 = vld [vmem:[%s5279_s15 + $0x9c] sm:$0xf] }
 0x114   : > { %v1475_v22 = vpop.f32.mrf.mxu3 }
 0x115   : > { %v1476_v26 = vadd.f32 %v5433_v42, %v1475_v22  ;;  %v3614_v22 = vor.u32 %v4234_v12, %v3613_v11 }
 0x116   : > { %v1573_v28 = vpop.f32.mrf.mxu2  ;;  %v1507_v50 = vpop.f32.mrf.mxu0 }
 0x117   : > { %v1525_v30 = vadd.f32 %v1524_v23, %v1476_v26  ;;  %v3606_v23 = vor.u32 %v4233_v4, %v3605_v15  ;;  %v1866_v4 = vld [vmem:[%s6099_s3 + $0x48] sm:$0xff] }
 0x118   : > { %v1527_v56 = vpop.f32.mrf.mxu1 }
 0x119   : > { %v5467_v32 = vadd.f32 %v1573_v28, %v1525_v30  ;;  %1624 = vmatmul.bf16.gmra.mxu3 %v3506_v27  ;;  %1673 = vmatmul.bf16.gmra.mxu0 %v3510_v29  ;;  %v1459_v28 = vadd.f32 %v5433_v42, %v5436_v48  ;;  %v4174_v30 = vld [vmem:[%s5279_s15 + $0x1c] sm:$0xf] }
 0x11b   : > { %1771 = vmatmul.bf16.gmra.mxu2 %v3518_v10  ;;  %1722 = vmatmul.bf16.gmra.mxu1 %v3514_v31  ;;  %v1871_v10 = vld [vmem:[%s6099_s3 + $0x70] sm:$0xff]  ;;  %v3391_v31 = vld [vmem:[%s5279_s15 + $0x38] sm:$0xf0]  ;;  %v1508_v35 = vadd.f32 %v1507_v50, %v1459_v28 }
 0x11c   : > { %v5469_v16 = vpop.f32.mrf.mxu3  ;;  %1878 = vmatpush.msra.mxu0 %v1871_v10  ;;  %v3394_v36 = vor.u32 %v4174_v30, %v3391_v31 }
 0x11e   : > { %v1509_v58 = vpop.f32.mrf.mxu0  ;;  %1879 = vmatpush.msra.mxu0 %v1870_v37  ;;  %v4206_v37 = vld [vmem:[%s5279_s15 + $0x11c] sm:$0xf] }
 0x11f   : > { %v1510_v41 = vadd.f32 %v1509_v58, %v1461_v38  ;;  %v1576_v58 = vpop.f32.mrf.mxu2  ;;  %v3519_v38 = vld [vmem:[%s5279_s15 + $0x138] sm:$0xf0] }
 0x124   : > { %v5479_v40 = vpop.f32.mrf.mxu3 }
 0x126   : > { %v1512_v6 = vpop.f32.mrf.mxu0 }
 0x127   : > { %v5553_v15 = vpop.f32.mrf.mxu2 }
 0x129   : > { %1629 = vmatmul.bf16.gmra.mxu3 %v3538_v44  ;;  %1678 = vmatmul.bf16.gmra.mxu0 %v3542_v45  ;;  %v1869_v44 = vld [vmem:[%s6099_s3 + $0x60] sm:$0xff] }
 0x12a   : > { %1880 = vmatpush.msra.mxu0 %v1869_v44 }
 0x12b   : > { %1776 = vmatmul.bf16.gmra.mxu2 %v3550_v24  ;;  %1727 = vmatmul.bf16.gmra.mxu1 %v3546_v46  ;;  %v1464_v24 = vadd.f32 %v5433_v42, %v5465_v13  ;;  %v4182_v46 = vld [vmem:[%s5279_s15 + $0x5c] sm:$0xf]  ;;  %v1466_v13 = vadd.f32 %v5433_v42, %v5471_v34 }
 0x12c   : > { %v5483_v51 = vpop.f32.mrf.mxu3  ;;  %v3426_v53 = vor.u32 %v4182_v46, %v3423_v47  ;;  %1881 = vmatpush.msra.mxu0 %v1868_v55  ;;  %v3455_v34 = vld [vmem:[%s5279_s15 + $0xb8] sm:$0xf0] }
 0x12d   : > { %v1513_v1 = vadd.f32 %v1512_v6, %v1464_v24  ;;  %v5547_v6 = vpop.f32.mrf.mxu1  ;;  %v3458_v12 = vor.u32 %v4190_v8, %v3455_v34  ;;  %v1862_v24 = vld [vmem:[%s6099_s3 + $0x28] sm:$0xff] }
 0x12e   : > { %v1514_v26 = vpop.f32.mrf.mxu0 }
 0x12f   : > { %v1515_v61 = vadd.f32 %v1514_v26, %v1466_v13 }
 0x134   : > { %v5491_v59 = vpop.f32.mrf.mxu3 }
 0x135   : > { %v1532_v18 = vpop.f32.mrf.mxu1 }
 0x136   : > { %v1556_v29 = vpop.f32.mrf.mxu0 }
 0x137   : > { %v1557_v39 = vadd.f32 %v1556_v29, %v1508_v35 }
 0x139   : > { %1634 = vmatmul.bf16.gmra.mxu3 %v3570_v62  ;;  %1683 = vmatmul.bf16.gmra.mxu0 %v3574_v0 }
 0x13b   : > { %1781 = vmatmul.bf16.gmra.mxu2 %v3582_v63  ;;  %1732 = vmatmul.bf16.gmra.mxu1 %v3578_v2  ;;  %v1867_v63 = vld [vmem:[%s6099_s3 + $0x50] sm:$0xff] }
 0x13c   : > { %v5495_v5 = vpop.f32.mrf.mxu3  ;;  %1882 = vmatpush.msra.mxu0 %v1867_v63 }
 0x13d   : > { %v5569_v29 = vpop.f32.mrf.mxu1 }
 0x13e   : > { %v1558_v48 = vpop.f32.mrf.mxu0  ;;  %1883 = vmatpush.msra.mxu0 %v1866_v4  ;;  %v1489_v4 = vadd.f32 %v5433_v42, %v5495_v5  ;;  %v1857_v5 = vld [vmem:[%s6099_s3] sm:$0xff] }
 0x13f   : > { %v1559_v45 = vadd.f32 %v1558_v48, %v1510_v41 }
 0x144   : > { %v5503_v17 = vpop.f32.mrf.mxu3 }
 0x146   : > { %v1561_v54 = vpop.f32.mrf.mxu0 }
 0x147   : > { %v1562_v57 = vadd.f32 %v1561_v54, %v1513_v1  ;;  %v4214_v1 = vld [vmem:[%s5279_s15 + $0x15c] sm:$0xf]  ;;  %v1484_v54 = vadd.f32 %v5433_v42, %v5483_v51  ;;  %v1859_v51 = vld [vmem:[%s6099_s3 + $0x10] sm:$0xff] }
 0x149   : > { %1639 = vmatmul.bf16.gmra.mxu3 %v3602_v21  ;;  %1688 = vmatmul.bf16.gmra.mxu0 %v3606_v23  ;;  %v1581_v23 = vpop.f32.mrf.mxu2 }
 0x14b   : > { %1786 = vmatmul.bf16.gmra.mxu2 %v3614_v22  ;;  %1737 = vmatmul.bf16.gmra.mxu1 %v3610_v25  ;;  %v1865_v22 = vld [vmem:[%s6099_s3 + $0x40] sm:$0xff]  ;;  %v4198_v25 = vld [vmem:[%s5279_s15 + $0xdc] sm:$0xf] }
 0x14c   : > { %v5510_v27 = vpop.f32.mrf.mxu3  ;;  %1884 = vmatpush.msra.mxu0 %v1865_v22  ;;  %v3490_v28 = vor.u32 %v4198_v25, %v3487_v7  ;;  %v1858_v25 = vld [vmem:[%s6099_s3 + $0x8] sm:$0xff] }
 0x14e   : > { %v1563_v0 = vpop.f32.mrf.mxu0 }
 0x14f   : > { %v1564_v2 = vadd.f32 %v1563_v0, %v1515_v61 }
 0x151   : > { %v5574_v30 = vpop.f32.mrf.mxu2 }
 0x154   : > { %v5519_v33 = vpop.f32.mrf.mxu3 }
 0x156   : > { %v1654_v34 = vpop.f32.mrf.mxu0 }
 0x159   : > { %1800 = vmatmul.bf16.vlgmr.msra.gmra.mxu3 %v3394_v36  ;;  %v1537_v36 = vpop.f32.mrf.mxu1  ;;  %v1586_v48 = vpop.f32.mrf.mxu2 }
 0x15c   : > { %v1605_v19 = vpop.f32.mrf.mxu3 }
 0x15d   : > { %v5526_v43 = vadd.f32 %v1605_v19, %v1557_v39  ;;  %v1479_v39 = vadd.f32 %v5433_v42, %v5469_v16 }
 0x15f   : > { %v1528_v44 = vadd.f32 %v1527_v56, %v1479_v39 }
 0x161   : > { %v1577_v46 = vadd.f32 %v1576_v58, %v1528_v44  ;;  %v1860_v58 = vld [vmem:[%s6099_s3 + $0x18] sm:$0xff] }
 0x164   : > { %v1607_v50 = vpop.f32.mrf.mxu3 }
 0x165   : > { %v5535_v52 = vadd.f32 %v1607_v50, %v1559_v45  ;;  %v5592_v45 = vpop.f32.mrf.mxu1  ;;  %v5596_v50 = vpop.f32.mrf.mxu2 }
 0x169   : > { %1805 = vmatmul.bf16.gmra.mxu3 %v3426_v53  ;;  %v3551_v53 = vld [vmem:[%s5279_s15 + $0x178] sm:$0xf0] }
 0x16a   : > { %v3554_v13 = vor.u32 %v4214_v1, %v3551_v53  ;;  %v1959_v53 = vld [vmem:[#allocation10 + $0x8] sm:$0xff] }
 0x16b   : > { %2027 = vmatpush.msra.mxu1 %v1959_v53 }
 0x16c   : > { %v1610_v60 = vpop.f32.mrf.mxu3 }
 0x16d   : > { %v5542_v62 = vadd.f32 %v1610_v60, %v1562_v57  ;;  %v1542_v55 = vpop.f32.mrf.mxu1  ;;  %v1533_v57 = vadd.f32 %v1532_v18, %v1484_v54  ;;  %v1591_v60 = vpop.f32.mrf.mxu2 }
 0x16f   : > { %v1582_v61 = vadd.f32 %v1581_v23, %v1533_v57  ;;  %v1538_v23 = vadd.f32 %v1537_v36, %v1489_v4  ;;  %v3615_v36 = vld [vmem:[%s5279_s15 + $0x1f8] sm:$0xf0] }
 0x174   : > { %v1612_v9 = vpop.f32.mrf.mxu3 }
 0x175   : > { %v5551_v11 = vadd.f32 %v1612_v9, %v1564_v2  ;;  %v5612_v2 = vpop.f32.mrf.mxu1  ;;  %v5617_v8 = vpop.f32.mrf.mxu2  ;;  %v4222_v9 = vld [vmem:[%s5279_s15 + $0x19c] sm:$0xf] }
 0x179   : > { %1810 = vmatmul.bf16.gmra.mxu3 %v3458_v12  ;;  %v3583_v12 = vld [vmem:[%s5279_s15 + $0x1b8] sm:$0xf0] }
 0x17c   : > { %v1615_v20 = vpop.f32.mrf.mxu3 }
 0x17d   : > { %v5559_v21 = vadd.f32 %v1615_v20, %v5438_v49  ;;  %v1864_v49 = vld [vmem:[%s6099_s3 + $0x38] sm:$0xff]  ;;  %v3586_v20 = vor.u32 %v4222_v9, %v3583_v12  ;;  %v1703_v22 = vpop.f32.mrf.mxu1  ;;  %v1752_v7 = vpop.f32.mrf.mxu2 }
 0x17e   : > { %1885 = vmatpush.msra.mxu0 %v1864_v49 }
 0x184   : > { %v1617_v26 = vpop.f32.mrf.mxu3 }
 0x185   : > { %v5567_v10 = vadd.f32 %v1617_v26, %v5449_v3  ;;  %v1863_v3 = vld [vmem:[%s6099_s3 + $0x30] sm:$0xff]  ;;  %v1587_v26 = vadd.f32 %v1586_v48, %v1538_v23  ;;  %v1754_v39 = vpop.f32.mrf.mxu2 }
 0x186   : > { %1886 = vmatpush.msra.mxu0 %v1863_v3  ;;  %v1705_v3 = vpop.f32.mrf.mxu1 }
 0x188   : > { %1887 = vmatpush.msra.mxu0 %v1862_v24 }
 0x189   : > { %1815 = vmatmul.bf16.gmra.mxu3 %v3490_v28  ;;  %v1656_v28 = vpop.f32.mrf.mxu0 }
 0x18c   : > { %v1620_v31 = vpop.f32.mrf.mxu3 }
 0x18d   : > { %v5577_v35 = vadd.f32 %v1620_v31, %v5454_v14  ;;  %v3522_v14 = vor.u32 %v4206_v37, %v3519_v38  ;;  %v4230_v37 = vld [vmem:[%s5279_s15 + $0x1dc] sm:$0xf]  ;;  %v1494_v38 = vadd.f32 %v5433_v42, %v5510_v27  ;;  %v1757_v1 = vpop.f32.mrf.mxu2  ;;  %s5833_s15 = scalar_lea.vmem [#allocation19], %s3352_s2  ;;  %s4364_s2 = sshll.u32 %s5155_s24, 9 }
 0x18e   : > { %v1708_v24 = vpop.f32.mrf.mxu1  ;;  %s3172_s22 = scalar_lea.hbm %s6128_s13, %s4364_s2  ;;  %s3173_s25 = sshll.u32 %s5833_s15, 4  ;;  %s3174_s25 = int_to_ptr.vmem [resolvable:$true] %s3173_s25 }
 0x18f   : > { %v1543_v44 = vadd.f32 %v1542_v55, %v1494_v38  ;;  %v1657_v55 = vadd.f32 %v1656_v28, %v5535_v52  ;;  %s3175_s4 = sshll.u32 %s3172_s22, 4  ;;  %s3160_s24 = scalar_lea.sflag [#allocation4], %s5273_s11  ;;  %s3176_s4 = int_to_ptr.hbm [resolvable:$true] %s3175_s4 }
 0x190   : > { %s4980_s12 = sshra.s32 %s3176_s4, 4  ;;  %s4981_s12 = int_to_ptr.hbm [resolvable:$true] %s4980_s12 }
 0x191   : > { %v1659_v48 = vpop.f32.mrf.mxu0  ;;  %v1706_v4 = vadd.f32 %v1705_v3, %v1657_v55  ;;  %s4982_s1 = scalar_lea.hbm %s4981_s12, 512  ;;  %p4987_p5 = scmp.lt.s32.totalorder %s4981_s12, %s6128_s13 }
 0x192   : > { %p4983_p1 = scmp.ne.s32.totalorder %s4981_s12, %s4982_s1  ;;  %p4988_p6 = scmp.lt.s32.totalorder %s4986_s21, %s4982_s1 }
 0x193   : > { %v1755_v23 = vadd.f32 %v1754_v39, %v1706_v4 }
 0x194   : > { %v1622_v19 = vpop.f32.mrf.mxu3  ;;  %p4984_p3 = pnand %p4983_p1, %p5239_p12  ;;  %p4989_p7 = por %p4988_p6, %p4987_p5 }
 0x195   : > { %v5587_v41 = vadd.f32 %v1622_v19, %v5467_v32  ;;  %v1861_v32 = vld [vmem:[%s6099_s3 + $0x20] sm:$0xff] }
 0x196   : > { %1888 = vmatpush.msra.mxu0 %v1861_v32  ;;  %v1710_v57 = vpop.f32.mrf.mxu1  ;;  %p4985_p11 = pneg %p4984_p3 }
 0x198   : > { %1889 = vmatpush.msra.mxu0 %v1860_v58  ;;  %p4990_p8 = pnand %p4989_p7, %p4985_p11 }
 0x199   : > { %1820 = vmatmul.bf16.gmra.mxu3 %v3522_v14  ;;  %v3618_v14 = vor.u32 %v4230_v37, %v3615_v36  ;;  %v1661_v54 = vpop.f32.mrf.mxu0 }
 0x19a   : > { %1890 = vmatpush.msra.mxu0 %v1859_v51  ;;  %v1662_v52 = vadd.f32 %v1661_v54, %v5551_v11 }
 0x19c   : > { %v1625_v47 = vpop.f32.mrf.mxu3  ;;  %1891 = vmatpush.msra.mxu0 %v1858_v25  ;;  %v1660_v25 = vadd.f32 %v1659_v48, %v5542_v62  ;;  %v1711_v39 = vadd.f32 %v1710_v57, %v1662_v52 }
 0x19d   : > { %v5594_v16 = vadd.f32 %v1625_v47, %v1577_v46  ;;  %v1592_v46 = vadd.f32 %v1591_v60, %v1543_v44 }
 0x19e   : > { %1892 = vmatpush.msra.mxu0 %v1857_v5  ;;  %v1713_v12 = vpop.f32.mrf.mxu1 }
 0x1a4   : > { %v5605_v56 = vpop.f32.mrf.mxu3 }
 0x1a6   : > { %v1715_v5 = vpop.f32.mrf.mxu1 }
 0x1a9   : > { %1825 = vmatmul.bf16.gmra.mxu3 %v3554_v13  ;;  %v1655_v13 = vadd.f32 %v1654_v34, %v5526_v43 }
 0x1ab   : > { %v1704_v58 = vadd.f32 %v1703_v22, %v1655_v13  ;;  %v1709_v22 = vadd.f32 %v1708_v24, %v1660_v25 }
 0x1ac   : > { %v1630_v63 = vpop.f32.mrf.mxu3 }
 0x1ad   : > { %v5610_v0 = vadd.f32 %v1630_v63, %v1582_v61  ;;  %v1759_v61 = vpop.f32.mrf.mxu2  ;;  %v1664_v63 = vpop.f32.mrf.mxu0  ;;  %v1753_v51 = vadd.f32 %v1752_v7, %v1704_v58  ;;  %v1758_v7 = vadd.f32 %v1757_v1, %v1709_v22  ;;  %v1481_v22 = vadd.f32 %v5433_v42, %v5479_v40 }
 0x1ae   : > { %v1718_v62 = vpop.f32.mrf.mxu1  ;;  %v1665_v48 = vadd.f32 %v1664_v63, %v5559_v21 }
 0x1b0   : > { %v1714_v1 = vadd.f32 %v1713_v12, %v1665_v48 }
 0x1b4   : > { %v5623_v18 = vpop.f32.mrf.mxu3 }
 0x1b6   : > { %v1720_v13 = vpop.f32.mrf.mxu1 }
 0x1b9   : > { %1830 = vmatmul.bf16.gmra.mxu3 %v3586_v20  ;;  %v1762_v20 = vpop.f32.mrf.mxu2 }
 0x1ba   : > { %v1763_v53 = vadd.f32 %v1762_v20, %v1714_v1 }
 0x1bc   : > { %v1635_v49 = vpop.f32.mrf.mxu3 }
 0x1bd   : > { %v5628_v31 = vadd.f32 %v1635_v49, %v1587_v26  ;;  %v1666_v26 = vpop.f32.mrf.mxu0 }
 0x1be   : > { %v1667_v54 = vadd.f32 %v1666_v26, %v5567_v10 }
 0x1c0   : > { %v1716_v55 = vadd.f32 %v1715_v5, %v1667_v54 }
 0x1c1   : > { %v1764_v28 = vpop.f32.mrf.mxu2 }
 0x1c2   : > { %v1765_v63 = vadd.f32 %v1764_v28, %v1716_v55  ;;  %v1530_v28 = vadd.f32 %v5547_v6, %v1481_v22 }
 0x1c4   : > { %v5637_v19 = vpop.f32.mrf.mxu3 }
 0x1c5   : > { %v1669_v38 = vpop.f32.mrf.mxu0 }
 0x1c9   : > { %1835 = vmatmul.bf16.gmra.mxu3 %v3618_v14  ;;  %v1760_v14 = vadd.f32 %v1759_v61, %v1711_v39  ;;  %v1579_v39 = vadd.f32 %v5553_v15, %v1530_v28 }
 0x1cb   : > { %v1628_v48 = vadd.f32 %v5605_v56, %v1579_v39 }
 0x1cc   : > { %v1640_v47 = vpop.f32.mrf.mxu3 }
 0x1cd   : > { %v5639_v32 = vadd.f32 %v1640_v47, %v1592_v46  ;;  %v1767_v47 = vpop.f32.mrf.mxu2  ;;  %v1671_v11 = vpop.f32.mrf.mxu0 }
 0x1ce   : > { %v1672_v26 = vadd.f32 %v1671_v11, %v5587_v41 }
 0x1d4   : > { %v5642_v27 = vpop.f32.mrf.mxu3 }
 0x1d5   : > { %v1769_v61 = vpop.f32.mrf.mxu2  ;;  %v1674_v21 = vpop.f32.mrf.mxu0 }
 0x1dc   : > { %v1801_v9 = vpop.f32.mrf.mxu3 }
 0x1dd   : > { %v1802_v60 = vadd.f32 %v1801_v9, %v1753_v51  ;;  %v1670_v9 = vadd.f32 %v1669_v38, %v5577_v35  ;;  %v1772_v10 = vpop.f32.mrf.mxu2  ;;  %v1721_v35 = vadd.f32 %v1720_v13, %v1672_v26 }
 0x1df   : > { %4538 = vtanh.f32 %v1802_v60  ;;  %v1719_v20 = vadd.f32 %v1718_v62, %v1670_v9 }
 0x1e1   : > { %v1768_v25 = vadd.f32 %v1767_v47, %v1719_v20 }
 0x1e4   : > { %v1803_v43 = vpop.f32.mrf.mxu3 }
 0x1e5   : > { %v4539_v34 = vpop.eup %4538  ;;  %v1804_v49 = vadd.f32 %v1803_v43, %v1755_v23  ;;  %v1723_v23 = vpop.f32.mrf.mxu1 }
 0x1e6   : > { %1893 = vmatmul.f32.vlgmr.msra.gmra.mxu0 %v4539_v34  ;;  %v1676_v43 = vpop.f32.mrf.mxu0 }
 0x1e7   : > { %4540 = vtanh.f32 %v1804_v49 }
 0x1ec   : > { %v1806_v37 = vpop.f32.mrf.mxu3 }
 0x1ed   : > { %v4541_v36 = vpop.eup %4540  ;;  %v1807_v3 = vadd.f32 %v1806_v37, %v1758_v7  ;;  %v1958_v7 = vld [vmem:[#allocation10] sm:$0xff]  ;;  %v1725_v52 = vpop.f32.mrf.mxu1  ;;  %v1770_v37 = vadd.f32 %v1769_v61, %v1721_v35 }
 0x1ee   : > { %1896 = vmatmul.f32.gmra.mxu0 %v4541_v36  ;;  %2028 = vmatpush.msra.mxu1 %v1958_v7  ;;  %v1675_v36 = vadd.f32 %v1674_v21, %v5594_v16  ;;  %v1486_v16 = vadd.f32 %v5433_v42, %v5491_v59 }
 0x1ef   : > { %4542 = vtanh.f32 %v1807_v3  ;;  %v1774_v3 = vpop.f32.mrf.mxu2 }
 0x1f0   : > { %v1724_v40 = vadd.f32 %v1723_v23, %v1675_v36  ;;  %v1535_v54 = vadd.f32 %v5569_v29, %v1486_v16 }
 0x1f2   : > { %v1584_v55 = vadd.f32 %v5574_v30, %v1535_v54 }
 0x1f4   : > { %v1808_v44 = vpop.f32.mrf.mxu3  ;;  %v1633_v59 = vadd.f32 %v5623_v18, %v1584_v55 }
 0x1f5   : > { %v4543_v46 = vpop.eup %4542  ;;  %v1809_v24 = vadd.f32 %v1808_v44, %v1760_v14  ;;  %v1679_v14 = vpop.f32.mrf.mxu0 }
 0x1f6   : > { %1899 = vmatmul.f32.gmra.mxu0 %v4543_v46  ;;  %v1728_v44 = vpop.f32.mrf.mxu1  ;;  %v1773_v46 = vadd.f32 %v1772_v10, %v1724_v40  ;;  %v1680_v56 = vadd.f32 %v1679_v14, %v5610_v0  ;;  %v1491_v0 = vadd.f32 %v5433_v42, %v5503_v17 }
 0x1f7   : > { %4544 = vtanh.f32 %v1809_v24  ;;  %v1677_v24 = vadd.f32 %v1676_v43, %v1628_v48  ;;  %v1777_v11 = vpop.f32.mrf.mxu2 }
 0x1f8   : > { %v1729_v21 = vadd.f32 %v1728_v44, %v1680_v56  ;;  %v1540_v30 = vadd.f32 %v5592_v45, %v1491_v0  ;;  %v2095_v56 = vld [vmem:[#allocation13 + $0x8] sm:$0xff] }
 0x1f9   : > { %2162 = vmatpush.msra.mxu2 %v2095_v56  ;;  %v4141_v56 = vld [vmem:[#allocation16 + $0x1c8] sm:$0xf] }
 0x1fa   : > { %v1589_v22 = vadd.f32 %v5596_v50, %v1540_v30 }
 0x1fc   : > { %v1811_v58 = vpop.f32.mrf.mxu3  ;;  %v1638_v17 = vadd.f32 %v5637_v19, %v1589_v22 }
 0x1fd   : > { %v4545_v51 = vpop.eup %4544  ;;  %v1812_v57 = vadd.f32 %v1811_v58, %v1763_v53  ;;  %v1726_v53 = vadd.f32 %v1725_v52, %v1677_v24  ;;  %v1681_v15 = vpop.f32.mrf.mxu0 }
 0x1fe   : > { %1902 = vmatmul.f32.gmra.mxu0 %v4545_v51  ;;  %v1730_v58 = vpop.f32.mrf.mxu1 }
 0x1ff   : > { %4546 = vtanh.f32 %v1812_v57  ;;  %v1775_v13 = vadd.f32 %v1774_v3, %v1726_v53 }
 0x204   : > { %v1813_v60 = vpop.f32.mrf.mxu3 }
 0x205   : > { %v4547_v4 = vpop.eup %4546  ;;  %v1814_v12 = vadd.f32 %v1813_v60, %v1765_v63  ;;  %v1779_v63 = vpop.f32.mrf.mxu2  ;;  %v1778_v60 = vadd.f32 %v1777_v11, %v1729_v21 }
 0x206   : > { %1905 = vmatmul.f32.gmra.mxu0 %v4547_v4  ;;  %v1684_v9 = vpop.f32.mrf.mxu0  ;;  %v1682_v4 = vadd.f32 %v1681_v15, %v1633_v59  ;;  %v1733_v20 = vpop.f32.mrf.mxu1 }
 0x207   : > { %4548 = vtanh.f32 %v1814_v12  ;;  %v1685_v18 = vadd.f32 %v1684_v9, %v5628_v31  ;;  %v1496_v31 = vadd.f32 %v5433_v42, %v5519_v33 }
 0x208   : > { %v1731_v10 = vadd.f32 %v1730_v58, %v1682_v4  ;;  %v5675_v58 = vld [vmem:[#allocation8] ss:$0 sm:$0xff] }
 0x209   : > { %v1734_v35 = vadd.f32 %v1733_v20, %v1685_v18  ;;  %v1545_v50 = vadd.f32 %v5612_v2, %v1496_v31 }
 0x20a   : > { %v1780_v26 = vadd.f32 %v1779_v63, %v1731_v10 }
 0x20b   : > { %v1594_v48 = vadd.f32 %v5617_v8, %v1545_v50 }
 0x20c   : > { %v1816_v34 = vpop.f32.mrf.mxu3 }
 0x20d   : > { %v4549_v49 = vpop.eup %4548  ;;  %v1817_v5 = vadd.f32 %v1816_v34, %v1768_v25  ;;  %v1782_v25 = vpop.f32.mrf.mxu2  ;;  %v1643_v42 = vadd.f32 %v5642_v27, %v1594_v48 }
 0x20e   : > { %1908 = vmatmul.f32.gmra.mxu0 %v4549_v49  ;;  %v1686_v43 = vpop.f32.mrf.mxu0  ;;  %v1735_v7 = vpop.f32.mrf.mxu1  ;;  %v1783_v52 = vadd.f32 %v1782_v25, %v1734_v35 }
 0x20f   : > { %4550 = vtanh.f32 %v1817_v5  ;;  %v1687_v28 = vadd.f32 %v1686_v43, %v1638_v17  ;;  %v2094_v43 = vld [vmem:[#allocation13] sm:$0xff] }
 0x210   : > { %2163 = vmatpush.msra.mxu2 %v2094_v43 }
 0x214   : > { %v1818_v41 = vpop.f32.mrf.mxu3 }
 0x215   : > { %v4551_v38 = vpop.eup %4550  ;;  %v1819_v62 = vadd.f32 %v1818_v41, %v1770_v37  ;;  %v1784_v37 = vpop.f32.mrf.mxu2 }
 0x216   : > { %1911 = vmatmul.f32.gmra.mxu0 %v4551_v38  ;;  %v1689_v41 = vpop.f32.mrf.mxu0  ;;  %v1736_v38 = vadd.f32 %v1735_v7, %v1687_v28  ;;  %v1738_v39 = vpop.f32.mrf.mxu1 }
 0x217   : > { %4552 = vtanh.f32 %v1819_v62  ;;  %v1690_v19 = vadd.f32 %v1689_v41, %v5639_v32 }
 0x218   : > { %v1785_v62 = vadd.f32 %v1784_v37, %v1736_v38 }
 0x219   : > { %v1739_v24 = vadd.f32 %v1738_v39, %v1690_v19 }
 0x21c   : > { %v1821_v47 = vpop.f32.mrf.mxu3 }
 0x21d   : > { %v4553_v6 = vpop.eup %4552  ;;  %v1822_v1 = vadd.f32 %v1821_v47, %v1773_v46  ;;  %v1787_v46 = vpop.f32.mrf.mxu2 }
 0x21e   : > { %1914 = vmatmul.f32.gmra.mxu0 %v4553_v6  ;;  %v1691_v33 = vpop.f32.mrf.mxu0  ;;  %v1788_v47 = vadd.f32 %v1787_v46, %v1739_v24  ;;  %v1740_v16 = vpop.f32.mrf.mxu1 }
 0x21f   : > { %4554 = vtanh.f32 %v1822_v1  ;;  %v1692_v6 = vadd.f32 %v1691_v33, %v1643_v42 }
 0x221   : > { %v1741_v32 = vadd.f32 %v1740_v16, %v1692_v6 }
 0x224   : > { %v1823_v51 = vpop.f32.mrf.mxu3 }
 0x225   : > { %v4555_v57 = vpop.eup %4554  ;;  %v1824_v61 = vadd.f32 %v1823_v51, %v1775_v13  ;;  %v1789_v53 = vpop.f32.mrf.mxu2 }
 0x226   : > { %1917 = vmatmul.f32.gmra.mxu0 %v4555_v57  ;;  %v1790_v15 = vadd.f32 %v1789_v53, %v1741_v32  ;;  %v4143_v53 = vld [vmem:[#allocation16 + $0x1e8] sm:$0xf0] }
 0x227   : > { %4556 = vtanh.f32 %v1824_v61 }
 0x22c   : > { %v1826_v12 = vpop.f32.mrf.mxu3 }
 0x22d   : > { %v4557_v29 = vpop.eup %4556  ;;  %v1827_v23 = vadd.f32 %v1826_v12, %v1778_v60 }
 0x22e   : > { %1920 = vmatmul.f32.gmra.mxu0 %v4557_v29 }
 0x22f   : > { %4558 = vtanh.f32 %v1827_v23 }
 0x234   : > { %v1828_v34 = vpop.f32.mrf.mxu3 }
 0x235   : > { %v4559_v49 = vpop.eup %4558  ;;  %v1829_v5 = vadd.f32 %v1828_v34, %v1780_v26 }
 0x236   : > { %1923 = vmatmul.f32.gmra.mxu0 %v4559_v49 }
 0x237   : > { %4560 = vtanh.f32 %v1829_v5 }
 0x23c   : > { %v1831_v45 = vpop.f32.mrf.mxu3 }
 0x23d   : > { %v4561_v36 = vpop.eup %4560  ;;  %v1832_v3 = vadd.f32 %v1831_v45, %v1783_v52 }
 0x23e   : > { %1926 = vmatmul.f32.gmra.mxu0 %v4561_v36 }
 0x23f   : > { %4562 = vtanh.f32 %v1832_v3 }
 0x244   : > { %v1833_v14 = vpop.f32.mrf.mxu3 }
 0x245   : > { %v4563_v40 = vpop.eup %4562  ;;  %v1834_v44 = vadd.f32 %v1833_v14, %v1785_v62 }
 0x246   : > { %1929 = vmatmul.f32.gmra.mxu0 %v4563_v40 }
 0x247   : > { %4564 = vtanh.f32 %v1834_v44 }
 0x24c   : > { %v1836_v2 = vpop.f32.mrf.mxu3 }
 0x24d   : > { %v4565_v1 = vpop.eup %4564  ;;  %v1837_v11 = vadd.f32 %v1836_v2, %v1788_v47  ;;  %v5709_v47 = vld [vmem:[#allocation11] ss:$0 sm:$0xff]  ;;  %v4133_v2 = vld [vmem:[#allocation16 + $0x1c0] sm:$0xf] }
 0x24e   : > { %1932 = vmatmul.f32.gmra.mxu0 %v4565_v1  ;;  %v4359_v1 = vld [vmem:[#allocation16 + $0x1dc] sm:$0xf0] }
 0x24f   : > { %4566 = vtanh.f32 %v1837_v11  ;;  %v4356_v11 = vld [vmem:[#allocation16 + $0x1cc] sm:$0xf]  ;;  %v4134_v32 = vor.u32 %v4359_v1, %v4133_v2  ;;  %v4045_v2 = vld [vmem:[#allocation16 + $0x108] sm:$0xf] }
 0x250   : > { %v4336_v1 = vld [vmem:[#allocation16 + $0x124] sm:$0xf0] }
 0x251   : > { %2639 = vmatpush.bf16.msrb.mxu3 %v4134_v32 }
 0x254   : > { %v1838_v8 = vpop.f32.mrf.mxu3 }
 0x255   : > { %v4567_v54 = vpop.eup %4566  ;;  %v1839_v13 = vadd.f32 %v1838_v8, %v1790_v15  ;;  %v4355_v15 = vld [vmem:[#allocation16 + $0x1c4] sm:$0xf] }
 0x256   : > { %1935 = vmatmul.f32.gmra.mxu0 %v4567_v54  ;;  %v4135_v8 = vld [vmem:[#allocation16 + $0x1e0] sm:$0xf0]  ;;  %v4146_v54 = vor.u32 %v4356_v11, %v4143_v53  ;;  %v4046_v11 = vor.u32 %v4336_v1, %v4045_v2  ;;  %v4300_v2 = vld [vmem:[#allocation16 + $0xc] sm:$0xf] }
 0x257   : > { %4568 = vtanh.f32 %v1839_v13  ;;  %v4138_v13 = vor.u32 %v4355_v15, %v4135_v8 }
 0x258   : > { %2786 = vmatpush.bf16.msrb.mxu2 %v4146_v54 }
 0x259   : > { %2688 = vmatpush.bf16.msrb.mxu0 %v4138_v13 }
 0x25d   : > { %v4569_v27 = vpop.eup %4568 }
 0x25e   : > { %1938 = vmatmul.f32.gmra.mxu0 %v4569_v27  ;;  %v4360_v27 = vld [vmem:[#allocation16 + $0x1e4] sm:$0xf0] }
 0x263   : > { %v1894_v51 = vpop.f32.mrf.mxu0 }
 0x264   : > { %v1895_v57 = vadd.f32 %v5675_v58, %v1894_v51 }
 0x266   : > { %4570 = vtanh.f32 %v1895_v57 }
 0x26b   : > { %v1897_v55 = vpop.f32.mrf.mxu0 }
 0x26c   : > { %v4571_v61 = vpop.eup %4570  ;;  %v1898_v21 = vadd.f32 %v5675_v58, %v1897_v55 }
 0x26d   : > { %3875 = vmatmul.msk.f32.vlgmr.msra.gmra.mxu1 %vm1964_vm0, %v4571_v61 }
 0x26e   : > { %4572 = vtanh.f32 %v1898_v21 }
 0x273   : > { %v1900_v59 = vpop.f32.mrf.mxu0 }
 0x274   : > { %v4573_v63 = vpop.eup %4572  ;;  %v1901_v9 = vadd.f32 %v5675_v58, %v1900_v59 }
 0x275   : > { %3876 = vmatmul.msk.f32.gmra.mxu1 %vm1964_vm0, %v4573_v63  ;;  %v4101_v63 = vld [vmem:[#allocation16 + $0x180] sm:$0xf] }
 0x276   : > { %4574 = vtanh.f32 %v1901_v9  ;;  %v4351_v9 = vld [vmem:[#allocation16 + $0x19c] sm:$0xf0] }
 0x27b   : > { %v1903_v60 = vpop.f32.mrf.mxu0 }
 0x27c   : > { %v4575_v4 = vpop.eup %4574  ;;  %v1904_v12 = vadd.f32 %v5675_v58, %v1903_v60  ;;  %v4348_v60 = vld [vmem:[#allocation16 + $0x18c] sm:$0xf] }
 0x27d   : > { %3877 = vmatmul.msk.f32.gmra.mxu1 %vm1964_vm0, %v4575_v4  ;;  %v4102_v4 = vor.u32 %v4351_v9, %v4101_v63  ;;  %v4013_v63 = vld [vmem:[#allocation16 + $0xc8] sm:$0xf] }
 0x27e   : > { %4576 = vtanh.f32 %v1904_v12  ;;  %v4111_v12 = vld [vmem:[#allocation16 + $0x1a8] sm:$0xf0]  ;;  %v4328_v9 = vld [vmem:[#allocation16 + $0xe4] sm:$0xf0] }
 0x27f   : > { %2640 = vmatpush.bf16.msrb.mxu3 %v4102_v4 }
 0x283   : > { %v1906_v29 = vpop.f32.mrf.mxu0 }
 0x284   : > { %v4577_v0 = vpop.eup %4576  ;;  %v1907_v23 = vadd.f32 %v5675_v58, %v1906_v29  ;;  %v4347_v29 = vld [vmem:[#allocation16 + $0x184] sm:$0xf] }
 0x285   : > { %3878 = vmatmul.msk.f32.gmra.mxu1 %vm1964_vm0, %v4577_v0  ;;  %v4103_v0 = vld [vmem:[#allocation16 + $0x1a0] sm:$0xf0] }
 0x286   : > { %4578 = vtanh.f32 %v1907_v23  ;;  %v4114_v23 = vor.u32 %v4348_v60, %v4111_v12  ;;  %v4014_v60 = vor.u32 %v4328_v9, %v4013_v63  ;;  %v4358_v63 = vld [vmem:[#allocation16 + $0x1dc] sm:$0xf] }
 0x288   : > { %2787 = vmatpush.bf16.msrb.mxu2 %v4114_v23 }
 0x28b   : > { %v1909_v20 = vpop.f32.mrf.mxu0 }
 0x28c   : > { %v4579_v10 = vpop.eup %4578  ;;  %v1910_v30 = vadd.f32 %v5675_v58, %v1909_v20  ;;  %v4106_v20 = vor.u32 %v4347_v29, %v4103_v0 }
 0x28d   : > { %3879 = vmatmul.msk.f32.gmra.mxu1 %vm1964_vm0, %v4579_v10  ;;  %v4109_v10 = vld [vmem:[#allocation16 + $0x188] sm:$0xf] }
 0x28e   : > { %4580 = vtanh.f32 %v1910_v30  ;;  %v4352_v30 = vld [vmem:[#allocation16 + $0x1a4] sm:$0xf0]  ;;  %2689 = vmatpush.bf16.msrb.mxu0 %v4106_v20 }
 0x293   : > { %v1912_v25 = vpop.f32.mrf.mxu0 }
 0x294   : > { %v4581_v26 = vpop.eup %4580  ;;  %v1913_v18 = vadd.f32 %v5675_v58, %v1912_v25  ;;  %v4110_v25 = vor.u32 %v4352_v30, %v4109_v10  ;;  %v3973_v10 = vld [vmem:[#allocation16 + $0x80] sm:$0xf] }
 0x295   : > { %3880 = vmatmul.msk.f32.gmra.mxu1 %vm1964_vm0, %v4581_v26  ;;  %v4319_v30 = vld [vmem:[#allocation16 + $0x9c] sm:$0xf0] }
 0x296   : > { %4582 = vtanh.f32 %v1913_v18 }
 0x29b   : > { %v1915_v34 = vpop.f32.mrf.mxu0 }
 0x29c   : > { %v4583_v49 = vpop.eup %4582  ;;  %v1916_v22 = vadd.f32 %v5675_v58, %v1915_v34 }
 0x29d   : > { %3881 = vmatmul.msk.f32.gmra.mxu1 %vm1964_vm0, %v4583_v49 }
 0x29e   : > { %4584 = vtanh.f32 %v1916_v22 }
 0x2a3   : > { %v1918_v5 = vpop.f32.mrf.mxu0 }
 0x2a4   : > { %v4585_v35 = vpop.eup %4584  ;;  %v1919_v17 = vadd.f32 %v5675_v58, %v1918_v5  ;;  %v4069_v5 = vld [vmem:[#allocation16 + $0x140] sm:$0xf] }
 0x2a5   : > { %3882 = vmatmul.msk.f32.gmra.mxu1 %vm1964_vm0, %v4585_v35  ;;  %v4343_v35 = vld [vmem:[#allocation16 + $0x15c] sm:$0xf0] }
 0x2a6   : > { %4586 = vtanh.f32 %v1919_v17  ;;  %v4340_v17 = vld [vmem:[#allocation16 + $0x14c] sm:$0xf] }
 0x2ab   : > { %v1921_v7 = vpop.f32.mrf.mxu0 }
 0x2ac   : > { %v4587_v52 = vpop.eup %4586  ;;  %v1922_v28 = vadd.f32 %v5675_v58, %v1921_v7  ;;  %v4070_v7 = vor.u32 %v4343_v35, %v4069_v5  ;;  %v3981_v5 = vld [vmem:[#allocation16 + $0x88] sm:$0xf] }
 0x2ad   : > { %3883 = vmatmul.msk.f32.gmra.mxu1 %vm1964_vm0, %v4587_v52  ;;  %v4079_v52 = vld [vmem:[#allocation16 + $0x168] sm:$0xf0]  ;;  %v4320_v35 = vld [vmem:[#allocation16 + $0xa4] sm:$0xf0] }
 0x2ae   : > { %4588 = vtanh.f32 %v1922_v28  ;;  %v4339_v28 = vld [vmem:[#allocation16 + $0x144] sm:$0xf]  ;;  %2641 = vmatpush.bf16.msrb.mxu3 %v4070_v7 }
 0x2b3   : > { %v1924_v37 = vpop.f32.mrf.mxu0 }
 0x2b4   : > { %v4589_v45 = vpop.eup %4588  ;;  %v1925_v36 = vadd.f32 %v5675_v58, %v1924_v37  ;;  %v4071_v37 = vld [vmem:[#allocation16 + $0x160] sm:$0xf0] }
 0x2b5   : > { %3884 = vmatmul.msk.f32.gmra.mxu1 %vm1964_vm0, %v4589_v45  ;;  %v4082_v45 = vor.u32 %v4340_v17, %v4079_v52  ;;  %v3982_v17 = vor.u32 %v4320_v35, %v3981_v5 }
 0x2b6   : > { %4590 = vtanh.f32 %v1925_v36  ;;  %v4074_v36 = vor.u32 %v4339_v28, %v4071_v37  ;;  %v3941_v37 = vld [vmem:[#allocation16 + $0x40] sm:$0xf] }
 0x2b7   : > { %2788 = vmatpush.bf16.msrb.mxu2 %v4082_v45  ;;  %v4311_v45 = vld [vmem:[#allocation16 + $0x5c] sm:$0xf0] }
 0x2b8   : > { %2690 = vmatpush.bf16.msrb.mxu0 %v4074_v36  ;;  %v4308_v36 = vld [vmem:[#allocation16 + $0x4c] sm:$0xf] }
 0x2bb   : > { %v1927_v31 = vpop.f32.mrf.mxu0 }
 0x2bc   : > { %v4591_v3 = vpop.eup %4590  ;;  %v1928_v41 = vadd.f32 %v5675_v58, %v1927_v31  ;;  %v4077_v31 = vld [vmem:[#allocation16 + $0x148] sm:$0xf] }
 0x2bd   : > { %3885 = vmatmul.msk.f32.gmra.mxu1 %vm1964_vm0, %v4591_v3  ;;  %v4344_v3 = vld [vmem:[#allocation16 + $0x164] sm:$0xf0] }
 0x2be   : > { %4592 = vtanh.f32 %v1928_v41  ;;  %v4078_v41 = vor.u32 %v4344_v3, %v4077_v31  ;;  %v3942_v31 = vor.u32 %v4311_v45, %v3941_v37  ;;  %v3951_v3 = vld [vmem:[#allocation16 + $0x68] sm:$0xf0]  ;;  %v4349_v37 = vld [vmem:[#allocation16 + $0x194] sm:$0xf] }
 0x2bf   : > { %v4119_v45 = vld [vmem:[#allocation16 + $0x1b0] sm:$0xf0] }
 0x2c3   : > { %v1930_v38 = vpop.f32.mrf.mxu0 }
 0x2c4   : > { %v4593_v50 = vpop.eup %4592  ;;  %v1931_v39 = vadd.f32 %v5675_v58, %v1930_v38 }
 0x2c5   : > { %3886 = vmatmul.msk.f32.gmra.mxu1 %vm1964_vm0, %v4593_v50 }
 0x2c6   : > { %4594 = vtanh.f32 %v1931_v39 }
 0x2cb   : > { %v1933_v62 = vpop.f32.mrf.mxu0 }
 0x2cc   : > { %v4595_v19 = vpop.eup %4594  ;;  %v1934_v14 = vadd.f32 %v5675_v58, %v1933_v62 }
 0x2cd   : > { %3887 = vmatmul.msk.f32.gmra.mxu1 %vm1964_vm0, %v4595_v19 }
 0x2ce   : > { %4596 = vtanh.f32 %v1934_v14 }
 0x2d3   : > { %v1936_v40 = vpop.f32.mrf.mxu0 }
 0x2d4   : > { %v4597_v48 = vpop.eup %4596  ;;  %v1937_v44 = vadd.f32 %v5675_v58, %v1936_v40  ;;  %v4037_v40 = vld [vmem:[#allocation16 + $0x100] sm:$0xf] }
 0x2d5   : > { %3888 = vmatmul.msk.f32.gmra.mxu1 %vm1964_vm0, %v4597_v48  ;;  %v4335_v48 = vld [vmem:[#allocation16 + $0x11c] sm:$0xf0] }
 0x2d6   : > { %4598 = vtanh.f32 %v1937_v44  ;;  %v4332_v44 = vld [vmem:[#allocation16 + $0x10c] sm:$0xf] }
 0x2db   : > { %v1939_v46 = vpop.f32.mrf.mxu0 }
 0x2dc   : > { %v4599_v24 = vpop.eup %4598  ;;  %v1940_v42 = vadd.f32 %v5675_v58, %v1939_v46  ;;  %v4142_v58 = vor.u32 %v4360_v27, %v4141_v56  ;;  %v4038_v46 = vor.u32 %v4335_v48, %v4037_v40  ;;  %v4005_v56 = vld [vmem:[#allocation16 + $0xc0] sm:$0xf]  ;;  %v4312_v48 = vld [vmem:[#allocation16 + $0x64] sm:$0xf0] }
 0x2dd   : > { %3889 = vmatmul.msk.f32.gmra.mxu1 %vm1964_vm0, %v4599_v24  ;;  %v4047_v24 = vld [vmem:[#allocation16 + $0x128] sm:$0xf0]  ;;  %v4327_v27 = vld [vmem:[#allocation16 + $0xdc] sm:$0xf0] }
 0x2de   : > { %4600 = vtanh.f32 %v1940_v42  ;;  %2737 = vmatpush.bf16.msrb.mxu1 %v4142_v58  ;;  %v4331_v42 = vld [vmem:[#allocation16 + $0x104] sm:$0xf]  ;;  %2642 = vmatpush.bf16.msrb.mxu3 %v4038_v46  ;;  %v4324_v58 = vld [vmem:[#allocation16 + $0xcc] sm:$0xf] }
 0x2e2   : > { %2738 = vmatpush.bf16.msrb.mxu1 %v4110_v25  ;;  %v4316_v25 = vld [vmem:[#allocation16 + $0x8c] sm:$0xf] }
 0x2e4   : > { %v4601_v33 = vpop.eup %4600 }
 0x2e5   : > { %3890 = vmatmul.msk.f32.gmra.mxu1 %vm1964_vm0, %v4601_v33  ;;  %v4039_v33 = vld [vmem:[#allocation16 + $0x120] sm:$0xf0] }
 0x2e6   : > { %2739 = vmatpush.bf16.msrb.mxu1 %v4078_v41  ;;  %v3954_v41 = vor.u32 %v4308_v36, %v3951_v3  ;;  %v4125_v36 = vld [vmem:[#allocation16 + $0x198] sm:$0xf] }
 0x2e7   : > { %v4354_v3 = vld [vmem:[#allocation16 + $0x1b4] sm:$0xf0] }
 0x2ea   : > { %v2030_v6 = vpop.f32.mrf.mxu1  ;;  %2740 = vmatpush.bf16.msrb.mxu1 %v4046_v11 }
 0x2eb   : > { %v2031_v16 = vadd.f32 %v5709_v47, %v2030_v6  ;;  %v4050_v6 = vor.u32 %v4332_v44, %v4047_v24 }
 0x2ed   : > { %4602 = vtanh.f32 %v2031_v16  ;;  %v4042_v16 = vor.u32 %v4331_v42, %v4039_v33  ;;  %2789 = vmatpush.bf16.msrb.mxu2 %v4050_v6  ;;  %v3909_v6 = vld [vmem:[#allocation16] sm:$0xf] }
 0x2ee   : > { %2741 = vmatpush.bf16.msrb.mxu1 %v4014_v60  ;;  %v4159_v60 = vld [vmem:[#allocation16 + $0x1f8] sm:$0xf0] }
 0x2ef   : > { %2691 = vmatpush.bf16.msrb.mxu0 %v4042_v16  ;;  %v4303_v16 = vld [vmem:[#allocation16 + $0x1c] sm:$0xf0] }
 0x2f2   : > { %v2033_v51 = vpop.f32.mrf.mxu1  ;;  %2742 = vmatpush.bf16.msrb.mxu1 %v3982_v17 }
 0x2f3   : > { %v4603_v57 = vpop.eup %4602  ;;  %v2034_v55 = vadd.f32 %v5709_v47, %v2033_v51  ;;  %v4006_v51 = vor.u32 %v4327_v27, %v4005_v56  ;;  %v4299_v56 = vld [vmem:[#allocation16 + $0x4] sm:$0xf] }
 0x2f4   : > { %3891 = vmatmul.msk.f32.vlgmr.msra.gmra.mxu2 %vm1964_vm0, %v4603_v57  ;;  %v4015_v57 = vld [vmem:[#allocation16 + $0xe8] sm:$0xf0]  ;;  %v3911_v27 = vld [vmem:[#allocation16 + $0x20] sm:$0xf0] }
 0x2f5   : > { %4604 = vtanh.f32 %v2034_v55  ;;  %v4323_v55 = vld [vmem:[#allocation16 + $0xc4] sm:$0xf]  ;;  %2643 = vmatpush.bf16.msrb.mxu3 %v4006_v51  ;;  %v3914_v51 = vor.u32 %v4299_v56, %v3911_v27  ;;  %v4063_v56 = vld [vmem:[#allocation16 + $0x138] sm:$0xf0] }
 0x2fa   : > { %v2036_v61 = vpop.f32.mrf.mxu1 }
 0x2fb   : > { %v4605_v21 = vpop.eup %4604  ;;  %v2037_v59 = vadd.f32 %v5709_v47, %v2036_v61  ;;  %v4007_v61 = vld [vmem:[#allocation16 + $0xe0] sm:$0xf0] }
 0x2fc   : > { %3892 = vmatmul.msk.f32.gmra.mxu2 %vm1964_vm0, %v4605_v21  ;;  %v4018_v21 = vor.u32 %v4324_v58, %v4015_v57  ;;  %v3917_v58 = vld [vmem:[#allocation16 + $0x8] sm:$0xf] }
 0x2fd   : > { %4606 = vtanh.f32 %v2037_v59  ;;  %v4010_v59 = vor.u32 %v4323_v55, %v4007_v61  ;;  %v4304_v57 = vld [vmem:[#allocation16 + $0x24] sm:$0xf0] }
 0x2fe   : > { %2790 = vmatpush.bf16.msrb.mxu2 %v4018_v21  ;;  %v3918_v55 = vor.u32 %v4304_v57, %v3917_v58  ;;  %v4149_v21 = vld [vmem:[#allocation16 + $0x1d0] sm:$0xf] }
 0x2ff   : > { %2692 = vmatpush.bf16.msrb.mxu0 %v4010_v59  ;;  %v4361_v59 = vld [vmem:[#allocation16 + $0x1ec] sm:$0xf0] }
 0x300   : > { %v4150_v9 = vor.u32 %v4361_v59, %v4149_v21  ;;  %v4333_v59 = vld [vmem:[#allocation16 + $0x114] sm:$0xf] }
 0x302   : > { %v2039_v26 = vpop.f32.mrf.mxu1 }
 0x303   : > { %v4607_v18 = vpop.eup %4606  ;;  %v2040_v43 = vadd.f32 %v5709_v47, %v2039_v26  ;;  %v3974_v26 = vor.u32 %v4319_v30, %v3973_v10  ;;  %v4362_v10 = vld [vmem:[#allocation16 + $0x1f4] sm:$0xf0] }
 0x304   : > { %3893 = vmatmul.msk.f32.gmra.mxu2 %vm1964_vm0, %v4607_v18  ;;  %v3983_v18 = vld [vmem:[#allocation16 + $0xa8] sm:$0xf0] }
 0x305   : > { %4608 = vtanh.f32 %v2040_v43  ;;  %v4315_v43 = vld [vmem:[#allocation16 + $0x84] sm:$0xf]  ;;  %2644 = vmatpush.bf16.msrb.mxu3 %v3974_v26  ;;  %v4353_v26 = vld [vmem:[#allocation16 + $0x1ac] sm:$0xf0] }
 0x309   : > { %2645 = vmatpush.bf16.msrb.mxu3 %v3942_v31  ;;  %v4122_v31 = vor.u32 %v4349_v37, %v4119_v45  ;;  %v3989_v45 = vld [vmem:[#allocation16 + $0x90] sm:$0xf] }
 0x30a   : > { %v2042_v34 = vpop.f32.mrf.mxu1 }
 0x30b   : > { %v4609_v49 = vpop.eup %4608  ;;  %v2043_v22 = vadd.f32 %v5709_v47, %v2042_v34  ;;  %v3975_v34 = vld [vmem:[#allocation16 + $0xa0] sm:$0xf0] }
 0x30c   : > { %3894 = vmatmul.msk.f32.gmra.mxu2 %vm1964_vm0, %v4609_v49  ;;  %v3986_v49 = vor.u32 %v4316_v25, %v3983_v18  ;;  %v4117_v25 = vld [vmem:[#allocation16 + $0x190] sm:$0xf]  ;;  %v4350_v18 = vld [vmem:[#allocation16 + $0x19c] sm:$0xf] }
 0x30d   : > { %4610 = vtanh.f32 %v2043_v22  ;;  %v3978_v22 = vor.u32 %v4315_v43, %v3975_v34  ;;  %v4118_v34 = vor.u32 %v4353_v26, %v4117_v25 }
 0x30e   : > { %2791 = vmatpush.bf16.msrb.mxu2 %v3986_v49  ;;  %v4127_v49 = vld [vmem:[#allocation16 + $0x1b8] sm:$0xf0] }
 0x30f   : > { %2693 = vmatpush.bf16.msrb.mxu0 %v3978_v22  ;;  %v4130_v22 = vor.u32 %v4350_v18, %v4127_v49 }
 0x312   : > { %v2045_v38 = vpop.f32.mrf.mxu1  ;;  %2792 = vmatpush.bf16.msrb.mxu2 %v3954_v41  ;;  %v4126_v41 = vor.u32 %v4354_v3, %v4125_v36  ;;  %v4321_v36 = vld [vmem:[#allocation16 + $0xac] sm:$0xf0] }
 0x313   : > { %v4611_v50 = vpop.eup %4610  ;;  %v2046_v39 = vadd.f32 %v5709_v47, %v2045_v38 }
 0x314   : > { %3895 = vmatmul.msk.f32.gmra.mxu2 %vm1964_vm0, %v4611_v50 }
 0x315   : > { %4612 = vtanh.f32 %v2046_v39 }
 0x31a   : > { %v2048_v62 = vpop.f32.mrf.mxu1 }
 0x31b   : > { %v4613_v19 = vpop.eup %4612  ;;  %v2049_v14 = vadd.f32 %v5709_v47, %v2048_v62  ;;  %v4307_v62 = vld [vmem:[#allocation16 + $0x44] sm:$0xf] }
 0x31c   : > { %3896 = vmatmul.msk.f32.gmra.mxu2 %vm1964_vm0, %v4613_v19  ;;  %v3943_v19 = vld [vmem:[#allocation16 + $0x60] sm:$0xf0] }
 0x31d   : > { %4614 = vtanh.f32 %v2049_v14  ;;  %v3949_v14 = vld [vmem:[#allocation16 + $0x48] sm:$0xf]  ;;  %v3946_v40 = vor.u32 %v4307_v62, %v3943_v19 }
 0x31e   : > { %v3950_v44 = vor.u32 %v4312_v48, %v3949_v14  ;;  %v4095_v14 = vld [vmem:[#allocation16 + $0x178] sm:$0xf0] }
 0x31f   : > { %2694 = vmatpush.bf16.msrb.mxu0 %v3946_v40 }
 0x320   : > { %2743 = vmatpush.bf16.msrb.mxu1 %v3950_v44 }
 0x322   : > { %v2051_v32 = vpop.f32.mrf.mxu1 }
 0x323   : > { %v4615_v53 = vpop.eup %4614  ;;  %v2052_v15 = vadd.f32 %v5709_v47, %v2051_v32  ;;  %v3910_v32 = vor.u32 %v4303_v16, %v3909_v6  ;;  %2695 = vmatpush.bf16.msrb.mxu0 %v3914_v51  ;;  %v4341_v6 = vld [vmem:[#allocation16 + $0x154] sm:$0xf] }
 0x324   : > { %3897 = vmatmul.msk.f32.gmra.mxu2 %vm1964_vm0, %v4615_v53  ;;  %v3919_v53 = vld [vmem:[#allocation16 + $0x28] sm:$0xf0]  ;;  %2744 = vmatpush.bf16.msrb.mxu1 %v3918_v55  ;;  %v4087_v16 = vld [vmem:[#allocation16 + $0x170] sm:$0xf0] }
 0x325   : > { %4616 = vtanh.f32 %v2052_v15  ;;  %v3922_v15 = vor.u32 %v4300_v2, %v3919_v53  ;;  %2646 = vmatpush.bf16.msrb.mxu3 %v3910_v32  ;;  %v4093_v2 = vld [vmem:[#allocation16 + $0x158] sm:$0xf]  ;;  %v4053_v53 = vld [vmem:[#allocation16 + $0x110] sm:$0xf] }
 0x327   : > { %2793 = vmatpush.bf16.msrb.mxu2 %v3922_v15  ;;  %v4337_v15 = vld [vmem:[#allocation16 + $0x12c] sm:$0xf0] }
 0x329   : > { %2835 = vmatpush.bf16.msra.mxu3 %v4150_v9  ;;  %v4061_v9 = vld [vmem:[#allocation16 + $0x118] sm:$0xf] }
 0x32a   : > { %v2054_v8 = vpop.f32.mrf.mxu1 }
 0x32b   : > { %v4617_v54 = vpop.eup %4616  ;;  %v2055_v13 = vadd.f32 %v5709_v47, %v2054_v8 }
 0x32c   : > { %3898 = vmatmul.msk.f32.gmra.mxu2 %vm1964_vm0, %v4617_v54 }
 0x32d   : > { %4618 = vtanh.f32 %v2055_v13  ;;  %2836 = vmatpush.bf16.msra.mxu3 %v4118_v34 }
 0x332   : > { %v2057_v4 = vpop.f32.mrf.mxu1 }
 0x333   : > { %v4619_v12 = vpop.eup %4618  ;;  %v2058_v29 = vadd.f32 %v5709_v47, %v2057_v4 }
 0x334   : > { %3899 = vmatmul.msk.f32.gmra.mxu2 %vm1964_vm0, %v4619_v12  ;;  %v5743_v12 = vld [vmem:[#allocation14] ss:$0 sm:$0xff] }
 0x335   : > { %4620 = vtanh.f32 %v2058_v29  ;;  %v4357_v29 = vld [vmem:[#allocation16 + $0x1d4] sm:$0xf] }
 0x33a   : > { %v2060_v0 = vpop.f32.mrf.mxu1 }
 0x33b   : > { %v4621_v23 = vpop.eup %4620  ;;  %v2061_v20 = vadd.f32 %v5709_v47, %v2060_v0  ;;  %v4151_v0 = vld [vmem:[#allocation16 + $0x1f0] sm:$0xf0] }
 0x33c   : > { %3900 = vmatmul.msk.f32.gmra.mxu2 %vm1964_vm0, %v4621_v23  ;;  %v4157_v23 = vld [vmem:[#allocation16 + $0x1d8] sm:$0xf] }
 0x33d   : > { %4622 = vtanh.f32 %v2061_v20  ;;  %v4154_v20 = vor.u32 %v4357_v29, %v4151_v0  ;;  %v4158_v30 = vor.u32 %v4362_v10, %v4157_v23  ;;  %v4021_v29 = vld [vmem:[#allocation16 + $0xd0] sm:$0xf]  ;;  %v4326_v23 = vld [vmem:[#allocation16 + $0xdc] sm:$0xf] }
 0x33e   : > { %v4329_v0 = vld [vmem:[#allocation16 + $0xec] sm:$0xf0] }
 0x33f   : > { %2884 = vmatpush.bf16.msra.mxu0 %v4154_v20  ;;  %2933 = vmatpush.bf16.msra.mxu1 %v4158_v30  ;;  %v4022_v10 = vor.u32 %v4329_v0, %v4021_v29  ;;  %v4031_v30 = vld [vmem:[#allocation16 + $0xf8] sm:$0xf0] }
 0x340   : > { %v4034_v25 = vor.u32 %v4326_v23, %v4031_v30  ;;  %v3935_v23 = vld [vmem:[#allocation16 + $0x38] sm:$0xf0] }
 0x342   : > { %v2063_v7 = vpop.f32.mrf.mxu1 }
 0x343   : > { %v4623_v52 = vpop.eup %4622  ;;  %v2064_v28 = vadd.f32 %v5709_v47, %v2063_v7  ;;  %2885 = vmatpush.bf16.msra.mxu0 %v4122_v31  ;;  %2934 = vmatpush.bf16.msra.mxu1 %v4126_v41  ;;  %v4318_v31 = vld [vmem:[#allocation16 + $0x9c] sm:$0xf]  ;;  %v3990_v41 = vor.u32 %v4321_v36, %v3989_v45 }
 0x344   : > { %3901 = vmatmul.msk.f32.gmra.mxu2 %vm1964_vm0, %v4623_v52 }
 0x345   : > { %4624 = vtanh.f32 %v2064_v28 }
 0x34a   : > { %v2066_v38 = vpop.f32.mrf.mxu1 }
 0x34b   : > { %v4625_v50 = vpop.eup %4624  ;;  %v2067_v39 = vadd.f32 %v5709_v47, %v2066_v38  ;;  %v4085_v38 = vld [vmem:[#allocation16 + $0x150] sm:$0xf] }
 0x34c   : > { %3902 = vmatmul.msk.f32.gmra.mxu2 %vm1964_vm0, %v4625_v50  ;;  %v4345_v50 = vld [vmem:[#allocation16 + $0x16c] sm:$0xf0] }
 0x34d   : > { %4626 = vtanh.f32 %v2067_v39  ;;  %v4342_v39 = vld [vmem:[#allocation16 + $0x15c] sm:$0xf]  ;;  %v4086_v19 = vor.u32 %v4345_v50, %v4085_v38 }
 0x34e   : > { %v4098_v40 = vor.u32 %v4342_v39, %v4095_v14  ;;  %v3999_v38 = vld [vmem:[#allocation16 + $0xb8] sm:$0xf0] }
 0x34f   : > { %2837 = vmatpush.bf16.msra.mxu3 %v4086_v19  ;;  %v4002_v50 = vor.u32 %v4318_v31, %v3999_v38 }
 0x352   : > { %v2069_v46 = vpop.f32.mrf.mxu1 }
 0x353   : > { %v4627_v24 = vpop.eup %4626  ;;  %v2070_v42 = vadd.f32 %v5709_v47, %v2069_v46 }
 0x354   : > { %3903 = vmatmul.msk.f32.gmra.mxu2 %vm1964_vm0, %v4627_v24 }
 0x355   : > { %4628 = vtanh.f32 %v2070_v42 }
 0x35a   : > { %v2072_v33 = vpop.f32.mrf.mxu1 }
 0x35b   : > { %v4629_v1 = vpop.eup %4628  ;;  %v2073_v11 = vadd.f32 %v5709_v47, %v2072_v33 }
 0x35c   : > { %3904 = vmatmul.msk.f32.gmra.mxu2 %vm1964_vm0, %v4629_v1  ;;  %v4090_v1 = vor.u32 %v4341_v6, %v4087_v16  ;;  %v4322_v6 = vld [vmem:[#allocation16 + $0xb4] sm:$0xf0] }
 0x35d   : > { %4630 = vtanh.f32 %v2073_v11  ;;  %v4346_v11 = vld [vmem:[#allocation16 + $0x174] sm:$0xf0] }
 0x35e   : > { %v4094_v32 = vor.u32 %v4346_v11, %v4093_v2  ;;  %2886 = vmatpush.bf16.msra.mxu0 %v4090_v1  ;;  %v3957_v2 = vld [vmem:[#allocation16 + $0x50] sm:$0xf]  ;;  %v4310_v11 = vld [vmem:[#allocation16 + $0x5c] sm:$0xf] }
 0x35f   : > { %v4313_v1 = vld [vmem:[#allocation16 + $0x6c] sm:$0xf0] }
 0x360   : > { %2935 = vmatpush.bf16.msra.mxu1 %v4094_v32 }
 0x362   : > { %v2075_v8 = vpop.f32.mrf.mxu1 }
 0x363   : > { %v4631_v54 = vpop.eup %4630  ;;  %v2076_v13 = vadd.f32 %v5709_v47, %v2075_v8  ;;  %v4162_v47 = vor.u32 %v4358_v63, %v4159_v60  ;;  %v4334_v8 = vld [vmem:[#allocation16 + $0x11c] sm:$0xf]  ;;  %v4055_v63 = vld [vmem:[#allocation16 + $0x130] sm:$0xf0] }
 0x364   : > { %3905 = vmatmul.msk.f32.gmra.mxu2 %vm1964_vm0, %v4631_v54  ;;  %v4066_v27 = vor.u32 %v4334_v8, %v4063_v56  ;;  %v4058_v60 = vor.u32 %v4333_v59, %v4055_v63  ;;  %v4314_v63 = vld [vmem:[#allocation16 + $0x74] sm:$0xf0] }
 0x365   : > { %4632 = vtanh.f32 %v2076_v13  ;;  %2982 = vmatpush.bf16.msra.mxu2 %v4162_v47  ;;  %v4054_v13 = vor.u32 %v4337_v15, %v4053_v53  ;;  %v4338_v47 = vld [vmem:[#allocation16 + $0x134] sm:$0xf0]  ;;  %v3958_v53 = vor.u32 %v4313_v1, %v3957_v2  ;;  %v3967_v15 = vld [vmem:[#allocation16 + $0x78] sm:$0xf0] }
 0x366   : > { %2887 = vmatpush.bf16.msra.mxu0 %v4058_v60  ;;  %v3970_v8 = vor.u32 %v4310_v11, %v3967_v15  ;;  %v3925_v60 = vld [vmem:[#allocation16 + $0x10] sm:$0xf] }
 0x367   : > { %2838 = vmatpush.bf16.msra.mxu3 %v4054_v13 }
 0x369   : > { %2983 = vmatpush.bf16.msra.mxu2 %v4130_v22 }
 0x36b   : > { %v4633_v61 = vpop.eup %4632  ;;  %2839 = vmatpush.bf16.msra.mxu3 %v4022_v10  ;;  %v3927_v10 = vld [vmem:[#allocation16 + $0x30] sm:$0xf0] }
 0x36c   : > { %3906 = vmatmul.msk.f32.gmra.mxu2 %vm1964_vm0, %v4633_v61 }
 0x36d   : > { %2984 = vmatpush.bf16.msra.mxu2 %v4098_v40 }
 0x36f   : > { %2840 = vmatpush.bf16.msra.mxu3 %v3990_v41  ;;  %v5809_v41 = vld [vmem:[#allocation17] sm:$0xff] }
 0x371   : > { %2985 = vmatpush.bf16.msra.mxu2 %v4066_v27 }
 0x373   : > { %2841 = vmatpush.bf16.msra.mxu3 %v3958_v53 }
 0x375   : > { %2986 = vmatpush.bf16.msra.mxu2 %v4034_v25 }
 0x377   : > { %v2165_v4 = vpop.f32.mrf.mxu2 }
 0x378   : > { %v2166_v43 = vadd.f32 %v5743_v12, %v2165_v4  ;;  %v4062_v4 = vor.u32 %v4338_v47, %v4061_v9  ;;  %v4305_v47 = vld [vmem:[#allocation16 + $0x2c] sm:$0xf0] }
 0x379   : > { %2987 = vmatpush.bf16.msra.mxu2 %v4002_v50  ;;  %v3926_v0 = vor.u32 %v4305_v47, %v3925_v60 }
 0x37a   : > { %4634 = vtanh.f32 %v2166_v43  ;;  %2936 = vmatpush.bf16.msra.mxu1 %v4062_v4  ;;  %v4302_v4 = vld [vmem:[#allocation16 + $0x1c] sm:$0xf] }
 0x37b   : > { %v3938_v30 = vor.u32 %v4302_v4, %v3935_v23  ;;  %2842 = vmatpush.bf16.msra.mxu3 %v3926_v0 }
 0x37d   : > { %2988 = vmatpush.bf16.msra.mxu2 %v3970_v8 }
 0x37f   : > { %v2168_v5 = vpop.f32.mrf.mxu2 }
 0x380   : > { %v2169_v35 = vadd.f32 %v5743_v12, %v2168_v5  ;;  %v4635_v17 = vpop.eup %4634  ;;  %v4325_v5 = vld [vmem:[#allocation16 + $0xd4] sm:$0xf] }
 0x381   : > { %2989 = vmatpush.bf16.msra.mxu2 %v3938_v30 }
 0x382   : > { %4636 = vtanh.f32 %v2169_v35  ;;  %v4023_v35 = vld [vmem:[#allocation16 + $0xf0] sm:$0xf0] }
 0x387   : > { %v2171_v7 = vpop.f32.mrf.mxu2 }
 0x388   : > { %v4637_v52 = vpop.eup %4636  ;;  %v2172_v62 = vadd.f32 %v5743_v12, %v2171_v7  ;;  %v4026_v7 = vor.u32 %v4325_v5, %v4023_v35 }
 0x389   : > { %v5747_v28 = vpack.c.bf16 %v4637_v52, %v4635_v17  ;;  %v4029_v17 = vld [vmem:[#allocation16 + $0xd8] sm:$0xf] }
 0x38a   : > { %4638 = vtanh.f32 %v2172_v62  ;;  %v4330_v52 = vld [vmem:[#allocation16 + $0xf4] sm:$0xf0]  ;;  %2888 = vmatpush.bf16.msra.mxu0 %v4026_v7 }
 0x38b   : > { %2647 = vmatmul.bf16.vlgmr.msrb.gmra.mxu3 %v5747_v28  ;;  %2696 = vmatmul.bf16.vlgmr.msrb.gmra.mxu0 %v5747_v28  ;;  %v4030_v37 = vor.u32 %v4330_v52, %v4029_v17 }
 0x38c   : > { %2745 = vmatmul.bf16.vlgmr.msrb.gmra.mxu1 %v5747_v28  ;;  %2794 = vmatmul.bf16.vlgmr.msrb.gmra.mxu2 %v5747_v28 }
 0x38d   : > { %2937 = vmatpush.bf16.msra.mxu1 %v4030_v37 }
 0x38f   : > { %v2174_v48 = vpop.f32.mrf.mxu2 }
 0x390   : > { %v2175_v44 = vadd.f32 %v5743_v12, %v2174_v48  ;;  %v4639_v46 = vpop.eup %4638 }
 0x392   : > { %4640 = vtanh.f32 %v2175_v44  ;;  %v4317_v44 = vld [vmem:[#allocation16 + $0x94] sm:$0xf] }
 0x397   : > { %v2177_v24 = vpop.f32.mrf.mxu2 }
 0x398   : > { %v4641_v42 = vpop.eup %4640  ;;  %v2178_v54 = vadd.f32 %v5743_v12, %v2177_v24  ;;  %v3997_v24 = vld [vmem:[#allocation16 + $0x98] sm:$0xf] }
 0x399   : > { %v5755_v33 = vpack.c.bf16 %v4641_v42, %v4639_v46  ;;  %v3991_v46 = vld [vmem:[#allocation16 + $0xb0] sm:$0xf0]  ;;  %v3998_v16 = vor.u32 %v4322_v6, %v3997_v24 }
 0x39a   : > { %4642 = vtanh.f32 %v2178_v54  ;;  %v3994_v42 = vor.u32 %v4317_v44, %v3991_v46 }
 0x39b   : > { %2652 = vmatmul.bf16.gmra.mxu3 %v5755_v33  ;;  %2701 = vmatmul.bf16.gmra.mxu0 %v5755_v33 }
 0x39c   : > { %2750 = vmatmul.bf16.gmra.mxu1 %v5755_v33  ;;  %2799 = vmatmul.bf16.gmra.mxu2 %v5755_v33 }
 0x39d   : > { %2889 = vmatpush.bf16.msra.mxu0 %v3994_v42  ;;  %2938 = vmatpush.bf16.msra.mxu1 %v3998_v16 }
 0x39f   : > { %v2180_v58 = vpop.f32.mrf.mxu2 }
 0x3a0   : > { %v2181_v51 = vadd.f32 %v5743_v12, %v2180_v58  ;;  %v4643_v57 = vpop.eup %4642 }
 0x3a2   : > { %4644 = vtanh.f32 %v2181_v51 }
 0x3a7   : > { %v2183_v55 = vpop.f32.mrf.mxu2 }
 0x3a8   : > { %v4645_v61 = vpop.eup %4644  ;;  %v2184_v20 = vadd.f32 %v5743_v12, %v2183_v55  ;;  %v3959_v55 = vld [vmem:[#allocation16 + $0x70] sm:$0xf0] }
 0x3a9   : > { %v5763_v21 = vpack.c.bf16 %v4645_v61, %v4643_v57  ;;  %v4309_v57 = vld [vmem:[#allocation16 + $0x54] sm:$0xf]  ;;  %v3965_v61 = vld [vmem:[#allocation16 + $0x58] sm:$0xf] }
 0x3aa   : > { %4646 = vtanh.f32 %v2184_v20  ;;  %v3962_v59 = vor.u32 %v4309_v57, %v3959_v55  ;;  %v3966_v9 = vor.u32 %v4314_v63, %v3965_v61  ;;  %v4301_v20 = vld [vmem:[#allocation16 + $0x14] sm:$0xf] }
 0x3ab   : > { %2657 = vmatmul.bf16.gmra.mxu3 %v5763_v21  ;;  %2706 = vmatmul.bf16.gmra.mxu0 %v5763_v21  ;;  %v3930_v25 = vor.u32 %v4301_v20, %v3927_v10 }
 0x3ac   : > { %2755 = vmatmul.bf16.gmra.mxu1 %v5763_v21  ;;  %2804 = vmatmul.bf16.gmra.mxu2 %v5763_v21 }
 0x3ad   : > { %2890 = vmatpush.bf16.msra.mxu0 %v3962_v59  ;;  %2939 = vmatpush.bf16.msra.mxu1 %v3966_v9 }
 0x3af   : > { %v2186_v26 = vpop.f32.mrf.mxu2 }
 0x3b0   : > { %v2187_v18 = vadd.f32 %v5743_v12, %v2186_v26  ;;  %v4647_v43 = vpop.eup %4646  ;;  %v3933_v26 = vld [vmem:[#allocation16 + $0x18] sm:$0xf] }
 0x3b1   : > { %2891 = vmatpush.bf16.msra.mxu0 %v3930_v25 }
 0x3b2   : > { %4648 = vtanh.f32 %v2187_v18  ;;  %v4306_v18 = vld [vmem:[#allocation16 + $0x34] sm:$0xf0] }
 0x3b7   : > { %v2189_v34 = vpop.f32.mrf.mxu2 }
 0x3b8   : > { %v4649_v49 = vpop.eup %4648  ;;  %v2190_v3 = vadd.f32 %v5743_v12, %v2189_v34  ;;  %v3934_v34 = vor.u32 %v4306_v18, %v3933_v26 }
 0x3b9   : > { %v5771_v22 = vpack.c.bf16 %v4649_v49, %v4647_v43 }
 0x3ba   : > { %4650 = vtanh.f32 %v2190_v3  ;;  %2940 = vmatpush.bf16.msra.mxu1 %v3934_v34 }
 0x3bb   : > { %2662 = vmatmul.bf16.gmra.mxu3 %v5771_v22  ;;  %2711 = vmatmul.bf16.gmra.mxu0 %v5771_v22 }
 0x3bc   : > { %2760 = vmatmul.bf16.gmra.mxu1 %v5771_v22  ;;  %2809 = vmatmul.bf16.gmra.mxu2 %v5771_v22 }
 0x3bf   : > { %v2192_v39 = vpop.f32.mrf.mxu2 }
 0x3c0   : > { %v2193_v62 = vadd.f32 %v5743_v12, %v2192_v39  ;;  %v4651_v19 = vpop.eup %4650  ;;  %v5817_v39 = vperm.slane %v5809_v41, 0 }
 0x3c2   : > { %4652 = vtanh.f32 %v2193_v62  ;;  %v5820_v62 = vperm.slane %v5809_v41, 2 }
 0x3c7   : > { %v2195_v14 = vpop.f32.mrf.mxu2 }
 0x3c8   : > { %v4653_v40 = vpop.eup %4652  ;;  %v2196_v32 = vadd.f32 %v5743_v12, %v2195_v14 }
 0x3c9   : > { %v5779_v48 = vpack.c.bf16 %v4653_v40, %v4651_v19  ;;  %v5825_v19 = vperm.slane %v5809_v41, 3 }
 0x3ca   : > { %4654 = vtanh.f32 %v2196_v32 }
 0x3cb   : > { %2667 = vmatmul.bf16.gmra.mxu3 %v5779_v48  ;;  %2716 = vmatmul.bf16.gmra.mxu0 %v5779_v48 }
 0x3cc   : > { %2765 = vmatmul.bf16.gmra.mxu1 %v5779_v48  ;;  %2814 = vmatmul.bf16.gmra.mxu2 %v5779_v48 }
 0x3cf   : > { %v2198_v54 = vpop.f32.mrf.mxu2 }
 0x3d0   : > { %v2199_v13 = vadd.f32 %v5743_v12, %v2198_v54  ;;  %v4655_v56 = vpop.eup %4654 }
 0x3d2   : > { %4656 = vtanh.f32 %v2199_v13 }
 0x3d7   : > { %v2201_v27 = vpop.f32.mrf.mxu2 }
 0x3d8   : > { %v4657_v58 = vpop.eup %4656  ;;  %v2202_v29 = vadd.f32 %v5743_v12, %v2201_v27 }
 0x3d9   : > { %v5787_v51 = vpack.c.bf16 %v4657_v58, %v4655_v56 }
 0x3da   : > { %4658 = vtanh.f32 %v2202_v29 }
 0x3db   : > { %2672 = vmatmul.bf16.gmra.mxu3 %v5787_v51  ;;  %2721 = vmatmul.bf16.gmra.mxu0 %v5787_v51 }
 0x3dc   : > { %2770 = vmatmul.bf16.gmra.mxu1 %v5787_v51  ;;  %2819 = vmatmul.bf16.gmra.mxu2 %v5787_v51 }
 0x3df   : > { %v2204_v43 = vpop.f32.mrf.mxu2 }
 0x3e0   : > { %v2205_v49 = vadd.f32 %v5743_v12, %v2204_v43  ;;  %v4659_v5 = vpop.eup %4658 }
 0x3e2   : > { %4660 = vtanh.f32 %v2205_v49 }
 0x3e7   : > { %v2207_v35 = vpop.f32.mrf.mxu2 }
 0x3e8   : > { %v4661_v17 = vpop.eup %4660  ;;  %v2208_v52 = vadd.f32 %v5743_v12, %v2207_v35 }
 0x3e9   : > { %v5795_v7 = vpack.c.bf16 %v4661_v17, %v4659_v5 }
 0x3ea   : > { %4662 = vtanh.f32 %v2208_v52 }
 0x3eb   : > { %2677 = vmatmul.bf16.gmra.mxu3 %v5795_v7  ;;  %2726 = vmatmul.bf16.gmra.mxu0 %v5795_v7 }
 0x3ec   : > { %2775 = vmatmul.bf16.gmra.mxu1 %v5795_v7  ;;  %2824 = vmatmul.bf16.gmra.mxu2 %v5795_v7 }
 0x3ef   : > { %v2210_v37 = vpop.f32.mrf.mxu2 }
 0x3f0   : > { %v2211_v45 = vadd.f32 %v5743_v12, %v2210_v37  ;;  %v4663_v36 = vpop.eup %4662  ;;  %v5812_v12 = vperm.slane %v5809_v41, 1 }
 0x3f2   : > { %4664 = vtanh.f32 %v2211_v45 }
 0x3f8   : > { %v4665_v31 = vpop.eup %4664 }
 0x3f9   : > { %v5803_v3 = vpack.c.bf16 %v4665_v31, %v4663_v36 }
 0x3fb   : > { %2682 = vmatmul.bf16.gmra.mxu3 %v5803_v3  ;;  %2731 = vmatmul.bf16.gmra.mxu0 %v5803_v3 }
 0x3fc   : > { %2780 = vmatmul.bf16.gmra.mxu1 %v5803_v3  ;;  %2829 = vmatmul.bf16.gmra.mxu2 %v5803_v3 }
 0x408   : > { %v2697_v38 = vpop.f32.mrf.mxu0 }
 0x409   : > { %v2746_v50 = vpop.f32.mrf.mxu1  ;;  %v2698_v40 = vadd.f32 %v2697_v38, %v5812_v12 }
 0x40a   : > { %v2747_v24 = vadd.f32 %v2746_v50, %v5820_v62 }
 0x40b   : > { %2843 = vmatmul.bf16.vlgmr.msra.gmra.mxu3 %v5747_v28  ;;  %2892 = vmatmul.bf16.vlgmr.msra.gmra.mxu0 %v5747_v28 }
 0x40c   : > { %2941 = vmatmul.bf16.vlgmr.msra.gmra.mxu1 %v5747_v28  ;;  %2990 = vmatmul.bf16.vlgmr.msra.gmra.mxu2 %v5747_v28 }
 0x40e   : > { %v2648_v14 = vpop.f32.mrf.mxu3 }
 0x40f   : > { %v2649_v44 = vadd.f32 %v2648_v14, %v5817_v39  ;;  %v2795_v46 = vpop.f32.mrf.mxu2 }
 0x410   : > { %v2796_v42 = vadd.f32 %v2795_v46, %v5825_v19  ;;  %v2699_v6 = vpop.f32.mrf.mxu0 }
 0x411   : > { %v3031_v16 = vpack.c.bf16 %v2698_v40, %v2649_v44  ;;  %v2748_v2 = vpop.f32.mrf.mxu1  ;;  %v2700_v11 = vadd.f32 %v2699_v6, %v5812_v12 }
 0x412   : > { %v3032_v1 = vpack.c.bf16 %v2796_v42, %v2747_v24  ;;  %v2749_v15 = vadd.f32 %v2748_v2, %v5820_v62 }
 0x413   : > { %3095 = vst [vmem:[%s5833_s15] sm:$0xff] %v3031_v16 }
 0x414   : > { %3096 = vst [vmem:[%s5833_s15 + $0x8] sm:$0xff] %v3032_v1 }
 0x416   : > { %v2650_v28 = vpop.f32.mrf.mxu3 }
 0x417   : > { %v2651_v32 = vadd.f32 %v2650_v28, %v5817_v39  ;;  %v2797_v53 = vpop.f32.mrf.mxu2 }
 0x418   : > { %v2798_v8 = vadd.f32 %v2797_v53, %v5825_v19  ;;  %v2702_v54 = vpop.f32.mrf.mxu0 }
 0x419   : > { %v3035_v13 = vpack.c.bf16 %v2700_v11, %v2651_v32  ;;  %v2751_v56 = vpop.f32.mrf.mxu1  ;;  %v2703_v57 = vadd.f32 %v2702_v54, %v5812_v12 }
 0x41a   : > { %v3036_v27 = vpack.c.bf16 %v2798_v8, %v2749_v15  ;;  %v2752_v59 = vadd.f32 %v2751_v56, %v5820_v62 }
 0x41b   : > { %3099 = vst [vmem:[%s5833_s15 + $0x20] sm:$0xff] %v3035_v13  ;;  %2848 = vmatmul.bf16.gmra.mxu3 %v5755_v33  ;;  %2897 = vmatmul.bf16.gmra.mxu0 %v5755_v33 }
 0x41c   : > { %3100 = vst [vmem:[%s5833_s15 + $0x28] sm:$0xff] %v3036_v27  ;;  %2946 = vmatmul.bf16.gmra.mxu1 %v5755_v33  ;;  %2995 = vmatmul.bf16.gmra.mxu2 %v5755_v33 }
 0x41e   : > { %v2653_v58 = vpop.f32.mrf.mxu3 }
 0x41f   : > { %v2654_v55 = vadd.f32 %v2653_v58, %v5817_v39  ;;  %v2800_v61 = vpop.f32.mrf.mxu2 }
 0x420   : > { %v2801_v63 = vadd.f32 %v2800_v61, %v5825_v19  ;;  %v2704_v9 = vpop.f32.mrf.mxu0 }
 0x421   : > { %v3039_v60 = vpack.c.bf16 %v2703_v57, %v2654_v55  ;;  %v2753_v47 = vpop.f32.mrf.mxu1  ;;  %v2705_v33 = vadd.f32 %v2704_v9, %v5812_v12 }
 0x422   : > { %v3040_v4 = vpack.c.bf16 %v2801_v63, %v2752_v59  ;;  %v2754_v20 = vadd.f32 %v2753_v47, %v5820_v62 }
 0x423   : > { %3103 = vst [vmem:[%s5833_s15 + $0x40] sm:$0xff] %v3039_v60 }
 0x424   : > { %3104 = vst [vmem:[%s5833_s15 + $0x48] sm:$0xff] %v3040_v4 }
 0x426   : > { %v2655_v29 = vpop.f32.mrf.mxu3 }
 0x427   : > { %v2656_v0 = vadd.f32 %v2655_v29, %v5817_v39  ;;  %v2802_v23 = vpop.f32.mrf.mxu2 }
 0x428   : > { %v2803_v10 = vadd.f32 %v2802_v23, %v5825_v19  ;;  %v2707_v30 = vpop.f32.mrf.mxu0 }
 0x429   : > { %v3043_v25 = vpack.c.bf16 %v2705_v33, %v2656_v0  ;;  %v2756_v26 = vpop.f32.mrf.mxu1  ;;  %v2708_v34 = vadd.f32 %v2707_v30, %v5812_v12 }
 0x42a   : > { %v3044_v18 = vpack.c.bf16 %v2803_v10, %v2754_v20  ;;  %v2757_v35 = vadd.f32 %v2756_v26, %v5820_v62 }
 0x42b   : > { %3107 = vst [vmem:[%s5833_s15 + $0x60] sm:$0xff] %v3043_v25  ;;  %2853 = vmatmul.bf16.gmra.mxu3 %v5763_v21  ;;  %2902 = vmatmul.bf16.gmra.mxu0 %v5763_v21 }
 0x42c   : > { %3108 = vst [vmem:[%s5833_s15 + $0x68] sm:$0xff] %v3044_v18  ;;  %2951 = vmatmul.bf16.gmra.mxu1 %v5763_v21  ;;  %3000 = vmatmul.bf16.gmra.mxu2 %v5763_v21 }
 0x42e   : > { %v2658_v43 = vpop.f32.mrf.mxu3 }
 0x42f   : > { %v2659_v49 = vadd.f32 %v2658_v43, %v5817_v39  ;;  %v2805_v5 = vpop.f32.mrf.mxu2 }
 0x430   : > { %v2806_v17 = vadd.f32 %v2805_v5, %v5825_v19  ;;  %v2709_v52 = vpop.f32.mrf.mxu0 }
 0x431   : > { %v3047_v37 = vpack.c.bf16 %v2708_v34, %v2659_v49  ;;  %v2758_v45 = vpop.f32.mrf.mxu1  ;;  %v2710_v21 = vadd.f32 %v2709_v52, %v5812_v12 }
 0x432   : > { %v3048_v36 = vpack.c.bf16 %v2806_v17, %v2757_v35  ;;  %v2759_v14 = vadd.f32 %v2758_v45, %v5820_v62 }
 0x433   : > { %3111 = vst [vmem:[%s5833_s15 + $0x80] sm:$0xff] %v3047_v37 }
 0x434   : > { %3112 = vst [vmem:[%s5833_s15 + $0x88] sm:$0xff] %v3048_v36 }
 0x436   : > { %v2660_v31 = vpop.f32.mrf.mxu3 }
 0x437   : > { %v2661_v38 = vadd.f32 %v2660_v31, %v5817_v39  ;;  %v2807_v50 = vpop.f32.mrf.mxu2 }
 0x438   : > { %v2808_v40 = vadd.f32 %v2807_v50, %v5825_v19  ;;  %v2712_v44 = vpop.f32.mrf.mxu0 }
 0x439   : > { %v3051_v46 = vpack.c.bf16 %v2710_v21, %v2661_v38  ;;  %v2761_v24 = vpop.f32.mrf.mxu1  ;;  %v2713_v16 = vadd.f32 %v2712_v44, %v5812_v12 }
 0x43a   : > { %v3052_v42 = vpack.c.bf16 %v2808_v40, %v2759_v14  ;;  %v2762_v28 = vadd.f32 %v2761_v24, %v5820_v62 }
 0x43b   : > { %3115 = vst [vmem:[%s5833_s15 + $0xa0] sm:$0xff] %v3051_v46  ;;  %2858 = vmatmul.bf16.gmra.mxu3 %v5771_v22  ;;  %2907 = vmatmul.bf16.gmra.mxu0 %v5771_v22 }
 0x43c   : > { %3116 = vst [vmem:[%s5833_s15 + $0xa8] sm:$0xff] %v3052_v42  ;;  %2956 = vmatmul.bf16.gmra.mxu1 %v5771_v22  ;;  %3005 = vmatmul.bf16.gmra.mxu2 %v5771_v22 }
 0x43e   : > { %v2663_v6 = vpop.f32.mrf.mxu3 }
 0x43f   : > { %v2664_v2 = vadd.f32 %v2663_v6, %v5817_v39  ;;  %v2810_v1 = vpop.f32.mrf.mxu2 }
 0x440   : > { %v2811_v11 = vadd.f32 %v2810_v1, %v5825_v19  ;;  %v2714_v32 = vpop.f32.mrf.mxu0 }
 0x441   : > { %v3055_v53 = vpack.c.bf16 %v2713_v16, %v2664_v2  ;;  %v2763_v15 = vpop.f32.mrf.mxu1  ;;  %v2715_v22 = vadd.f32 %v2714_v32, %v5812_v12 }
 0x442   : > { %v3056_v8 = vpack.c.bf16 %v2811_v11, %v2762_v28  ;;  %v2764_v27 = vadd.f32 %v2763_v15, %v5820_v62 }
 0x443   : > { %3119 = vst [vmem:[%s5833_s15 + $0xc0] sm:$0xff] %v3055_v53 }
 0x444   : > { %3120 = vst [vmem:[%s5833_s15 + $0xc8] sm:$0xff] %v3056_v8 }
 0x446   : > { %v2665_v54 = vpop.f32.mrf.mxu3 }
 0x447   : > { %v2666_v13 = vadd.f32 %v2665_v54, %v5817_v39  ;;  %v2812_v56 = vpop.f32.mrf.mxu2 }
 0x448   : > { %v2813_v58 = vadd.f32 %v2812_v56, %v5825_v19  ;;  %v2717_v57 = vpop.f32.mrf.mxu0 }
 0x449   : > { %v3059_v55 = vpack.c.bf16 %v2715_v22, %v2666_v13  ;;  %v2766_v61 = vpop.f32.mrf.mxu1  ;;  %v2718_v9 = vadd.f32 %v2717_v57, %v5812_v12 }
 0x44a   : > { %v3060_v59 = vpack.c.bf16 %v2813_v58, %v2764_v27  ;;  %v2767_v4 = vadd.f32 %v2766_v61, %v5820_v62 }
 0x44b   : > { %3123 = vst [vmem:[%s5833_s15 + $0xe0] sm:$0xff] %v3059_v55  ;;  %2863 = vmatmul.bf16.gmra.mxu3 %v5779_v48  ;;  %2912 = vmatmul.bf16.gmra.mxu0 %v5779_v48 }
 0x44c   : > { %3124 = vst [vmem:[%s5833_s15 + $0xe8] sm:$0xff] %v3060_v59  ;;  %2961 = vmatmul.bf16.gmra.mxu1 %v5779_v48  ;;  %3010 = vmatmul.bf16.gmra.mxu2 %v5779_v48 }
 0x44e   : > { %v2668_v63 = vpop.f32.mrf.mxu3 }
 0x44f   : > { %v2669_v60 = vadd.f32 %v2668_v63, %v5817_v39  ;;  %v2815_v47 = vpop.f32.mrf.mxu2 }
 0x450   : > { %v2816_v29 = vadd.f32 %v2815_v47, %v5825_v19  ;;  %v2719_v33 = vpop.f32.mrf.mxu0 }
 0x451   : > { %v3063_v0 = vpack.c.bf16 %v2718_v9, %v2669_v60  ;;  %v2768_v23 = vpop.f32.mrf.mxu1  ;;  %v2720_v48 = vadd.f32 %v2719_v33, %v5812_v12 }
 0x452   : > { %v3064_v20 = vpack.c.bf16 %v2816_v29, %v2767_v4  ;;  %v2769_v26 = vadd.f32 %v2768_v23, %v5820_v62 }
 0x453   : > { %3127 = vst [vmem:[%s5833_s15 + $0x100] sm:$0xff] %v3063_v0 }
 0x454   : > { %3128 = vst [vmem:[%s5833_s15 + $0x108] sm:$0xff] %v3064_v20 }
 0x456   : > { %v2670_v10 = vpop.f32.mrf.mxu3 }
 0x457   : > { %v2671_v30 = vadd.f32 %v2670_v10, %v5817_v39  ;;  %v2817_v25 = vpop.f32.mrf.mxu2 }
 0x458   : > { %v2818_v18 = vadd.f32 %v2817_v25, %v5825_v19  ;;  %v2722_v43 = vpop.f32.mrf.mxu0 }
 0x459   : > { %v3067_v34 = vpack.c.bf16 %v2720_v48, %v2671_v30  ;;  %v2771_v49 = vpop.f32.mrf.mxu1  ;;  %v2723_v17 = vadd.f32 %v2722_v43, %v5812_v12 }
 0x45a   : > { %v3068_v5 = vpack.c.bf16 %v2818_v18, %v2769_v26  ;;  %v2772_v45 = vadd.f32 %v2771_v49, %v5820_v62 }
 0x45b   : > { %3131 = vst [vmem:[%s5833_s15 + $0x120] sm:$0xff] %v3067_v34  ;;  %2868 = vmatmul.bf16.gmra.mxu3 %v5787_v51  ;;  %2917 = vmatmul.bf16.gmra.mxu0 %v5787_v51 }
 0x45c   : > { %3132 = vst [vmem:[%s5833_s15 + $0x128] sm:$0xff] %v3068_v5  ;;  %2966 = vmatmul.bf16.gmra.mxu1 %v5787_v51  ;;  %3015 = vmatmul.bf16.gmra.mxu2 %v5787_v51 }
 0x45e   : > { %v2673_v35 = vpop.f32.mrf.mxu3 }
 0x45f   : > { %v2674_v52 = vadd.f32 %v2673_v35, %v5817_v39  ;;  %v2820_v37 = vpop.f32.mrf.mxu2 }
 0x460   : > { %v2821_v36 = vadd.f32 %v2820_v37, %v5825_v19  ;;  %v2724_v31 = vpop.f32.mrf.mxu0 }
 0x461   : > { %v3071_v21 = vpack.c.bf16 %v2723_v17, %v2674_v52  ;;  %v2773_v38 = vpop.f32.mrf.mxu1  ;;  %v2725_v51 = vadd.f32 %v2724_v31, %v5812_v12  ;;  %v5955_v17 = vperm.slane %v5809_v41, 5  ;;  %v5958_v52 = vperm.slane %v5809_v41, 4 }
 0x462   : > { %v3072_v50 = vpack.c.bf16 %v2821_v36, %v2772_v45  ;;  %v2774_v46 = vadd.f32 %v2773_v38, %v5820_v62 }
 0x463   : > { %3135 = vst [vmem:[%s5833_s15 + $0x140] sm:$0xff] %v3071_v21 }
 0x464   : > { %3136 = vst [vmem:[%s5833_s15 + $0x148] sm:$0xff] %v3072_v50 }
 0x466   : > { %v2675_v14 = vpop.f32.mrf.mxu3 }
 0x467   : > { %v2676_v40 = vadd.f32 %v2675_v14, %v5817_v39  ;;  %v2822_v44 = vpop.f32.mrf.mxu2 }
 0x468   : > { %v2823_v24 = vadd.f32 %v2822_v44, %v5825_v19  ;;  %v2727_v42 = vpop.f32.mrf.mxu0 }
 0x469   : > { %v3075_v6 = vpack.c.bf16 %v2725_v51, %v2676_v40  ;;  %v2776_v16 = vpop.f32.mrf.mxu1  ;;  %v2728_v28 = vadd.f32 %v2727_v42, %v5812_v12 }
 0x46a   : > { %v3076_v2 = vpack.c.bf16 %v2823_v24, %v2774_v46  ;;  %v2777_v53 = vadd.f32 %v2776_v16, %v5820_v62 }
 0x46b   : > { %3139 = vst [vmem:[%s5833_s15 + $0x160] sm:$0xff] %v3075_v6  ;;  %2873 = vmatmul.bf16.gmra.mxu3 %v5795_v7  ;;  %2922 = vmatmul.bf16.gmra.mxu0 %v5795_v7 }
 0x46c   : > { %3140 = vst [vmem:[%s5833_s15 + $0x168] sm:$0xff] %v3076_v2  ;;  %2971 = vmatmul.bf16.gmra.mxu1 %v5795_v7  ;;  %3020 = vmatmul.bf16.gmra.mxu2 %v5795_v7 }
 0x46e   : > { %v2678_v1 = vpop.f32.mrf.mxu3 }
 0x46f   : > { %v2679_v11 = vadd.f32 %v2678_v1, %v5817_v39  ;;  %v2825_v32 = vpop.f32.mrf.mxu2 }
 0x470   : > { %v2826_v15 = vadd.f32 %v2825_v32, %v5825_v19  ;;  %v2729_v8 = vpop.f32.mrf.mxu0 }
 0x471   : > { %v3079_v54 = vpack.c.bf16 %v2728_v28, %v2679_v11  ;;  %v2778_v22 = vpop.f32.mrf.mxu1  ;;  %v2730_v7 = vadd.f32 %v2729_v8, %v5812_v12 }
 0x472   : > { %v3080_v13 = vpack.c.bf16 %v2826_v15, %v2777_v53  ;;  %v2779_v57 = vadd.f32 %v2778_v22, %v5820_v62 }
 0x473   : > { %3143 = vst [vmem:[%s5833_s15 + $0x180] sm:$0xff] %v3079_v54 }
 0x474   : > { %3144 = vst [vmem:[%s5833_s15 + $0x188] sm:$0xff] %v3080_v13 }
 0x476   : > { %v2680_v56 = vpop.f32.mrf.mxu3 }
 0x477   : > { %v2681_v27 = vadd.f32 %v2680_v56, %v5817_v39  ;;  %v2827_v58 = vpop.f32.mrf.mxu2 }
 0x478   : > { %v2828_v55 = vadd.f32 %v2827_v58, %v5825_v19  ;;  %v2732_v61 = vpop.f32.mrf.mxu0 }
 0x479   : > { %v3083_v59 = vpack.c.bf16 %v2730_v7, %v2681_v27  ;;  %v2781_v63 = vpop.f32.mrf.mxu1  ;;  %v2733_v47 = vadd.f32 %v2732_v61, %v5812_v12 }
 0x47a   : > { %v3084_v9 = vpack.c.bf16 %v2828_v55, %v2779_v57  ;;  %v2782_v33 = vadd.f32 %v2781_v63, %v5820_v62 }
 0x47b   : > { %3147 = vst [vmem:[%s5833_s15 + $0x1a0] sm:$0xff] %v3083_v59  ;;  %2878 = vmatmul.bf16.gmra.mxu3 %v5803_v3  ;;  %2927 = vmatmul.bf16.gmra.mxu0 %v5803_v3 }
 0x47c   : > { %3148 = vst [vmem:[%s5833_s15 + $0x1a8] sm:$0xff] %v3084_v9  ;;  %2976 = vmatmul.bf16.gmra.mxu1 %v5803_v3  ;;  %3025 = vmatmul.bf16.gmra.mxu2 %v5803_v3 }
 0x47e   : > { %v2683_v60 = vpop.f32.mrf.mxu3 }
 0x47f   : > { %v2684_v4 = vadd.f32 %v2683_v60, %v5817_v39  ;;  %v2830_v29 = vpop.f32.mrf.mxu2 }
 0x480   : > { %v2831_v0 = vadd.f32 %v2830_v29, %v5825_v19  ;;  %v2734_v23 = vpop.f32.mrf.mxu0 }
 0x481   : > { %v3087_v20 = vpack.c.bf16 %v2733_v47, %v2684_v4  ;;  %v2783_v10 = vpop.f32.mrf.mxu1  ;;  %v2735_v3 = vadd.f32 %v2734_v23, %v5812_v12  ;;  %v5962_v12 = vperm.slane %v5809_v41, 6 }
 0x482   : > { %v3088_v48 = vpack.c.bf16 %v2831_v0, %v2782_v33  ;;  %v2784_v18 = vadd.f32 %v2783_v10, %v5820_v62 }
 0x483   : > { %3151 = vst [vmem:[%s5833_s15 + $0x1c0] sm:$0xff] %v3087_v20 }
 0x484   : > { %3152 = vst [vmem:[%s5833_s15 + $0x1c8] sm:$0xff] %v3088_v48 }
 0x486   : > { %v2685_v30 = vpop.f32.mrf.mxu3 }
 0x487   : > { %v2686_v25 = vadd.f32 %v2685_v30, %v5817_v39  ;;  %v2832_v26 = vpop.f32.mrf.mxu2  ;;  %v5965_v39 = vperm.slane %v5809_v41, 7 }
 0x488   : > { %v2833_v43 = vadd.f32 %v2832_v26, %v5825_v19  ;;  %v2893_v34 = vpop.f32.mrf.mxu0 }
 0x489   : > { %v3091_v49 = vpack.c.bf16 %v2735_v3, %v2686_v25  ;;  %v2942_v5 = vpop.f32.mrf.mxu1  ;;  %v2894_v19 = vadd.f32 %v2893_v34, %v5955_v17 }
 0x48a   : > { %v3092_v35 = vpack.c.bf16 %v2833_v43, %v2784_v18  ;;  %v2943_v36 = vadd.f32 %v2942_v5, %v5962_v12 }
 0x48b   : > { %3155 = vst [vmem:[%s5833_s15 + $0x1e0] sm:$0xff] %v3091_v49 }
 0x48c   : > { %3156 = vst [vmem:[%s5833_s15 + $0x1e8] sm:$0xff] %v3092_v35 }
 0x48e   : > { %v2844_v62 = vpop.f32.mrf.mxu3 }
 0x48f   : > { %v2845_v37 = vadd.f32 %v2844_v62, %v5958_v52  ;;  %v2991_v45 = vpop.f32.mrf.mxu2 }
 0x490   : > { %v2992_v31 = vadd.f32 %v2991_v45, %v5965_v39  ;;  %v2895_v21 = vpop.f32.mrf.mxu0 }
 0x491   : > { %v3033_v38 = vpack.c.bf16 %v2894_v19, %v2845_v37  ;;  %v2944_v50 = vpop.f32.mrf.mxu1  ;;  %v2896_v51 = vadd.f32 %v2895_v21, %v5955_v17 }
 0x492   : > { %v3034_v14 = vpack.c.bf16 %v2992_v31, %v2943_v36  ;;  %v2945_v46 = vadd.f32 %v2944_v50, %v5962_v12 }
 0x493   : > { %3097 = vst [vmem:[%s5833_s15 + $0x10] sm:$0xff] %v3033_v38 }
 0x494   : > { %3098 = vst [vmem:[%s5833_s15 + $0x18] sm:$0xff] %v3034_v14 }
 0x496   : > { %v2846_v41 = vpop.f32.mrf.mxu3 }
 0x497   : > { %v2847_v40 = vadd.f32 %v2846_v41, %v5958_v52  ;;  %v2993_v44 = vpop.f32.mrf.mxu2 }
 0x498   : > { %v2994_v24 = vadd.f32 %v2993_v44, %v5965_v39  ;;  %v2898_v42 = vpop.f32.mrf.mxu0 }
 0x499   : > { %v3037_v6 = vpack.c.bf16 %v2896_v51, %v2847_v40  ;;  %v2947_v16 = vpop.f32.mrf.mxu1  ;;  %v2899_v28 = vadd.f32 %v2898_v42, %v5955_v17 }
 0x49a   : > { %v3038_v2 = vpack.c.bf16 %v2994_v24, %v2945_v46  ;;  %v2948_v53 = vadd.f32 %v2947_v16, %v5962_v12 }
 0x49b   : > { %3101 = vst [vmem:[%s5833_s15 + $0x30] sm:$0xff] %v3037_v6 }
 0x49c   : > { %3102 = vst [vmem:[%s5833_s15 + $0x38] sm:$0xff] %v3038_v2 }
 0x49e   : > { %v2849_v1 = vpop.f32.mrf.mxu3 }
 0x49f   : > { %v2850_v11 = vadd.f32 %v2849_v1, %v5958_v52  ;;  %v2996_v32 = vpop.f32.mrf.mxu2 }
 0x4a0   : > { %v2997_v15 = vadd.f32 %v2996_v32, %v5965_v39  ;;  %v2900_v8 = vpop.f32.mrf.mxu0 }
 0x4a1   : > { %v3041_v54 = vpack.c.bf16 %v2899_v28, %v2850_v11  ;;  %v2949_v22 = vpop.f32.mrf.mxu1  ;;  %v2901_v7 = vadd.f32 %v2900_v8, %v5955_v17 }
 0x4a2   : > { %v3042_v13 = vpack.c.bf16 %v2997_v15, %v2948_v53  ;;  %v2950_v57 = vadd.f32 %v2949_v22, %v5962_v12 }
 0x4a3   : > { %3105 = vst [vmem:[%s5833_s15 + $0x50] sm:$0xff] %v3041_v54 }
 0x4a4   : > { %3106 = vst [vmem:[%s5833_s15 + $0x58] sm:$0xff] %v3042_v13 }
 0x4a6   : > { %v2851_v56 = vpop.f32.mrf.mxu3 }
 0x4a7   : > { %v2852_v27 = vadd.f32 %v2851_v56, %v5958_v52  ;;  %v2998_v58 = vpop.f32.mrf.mxu2 }
 0x4a8   : > { %v2999_v55 = vadd.f32 %v2998_v58, %v5965_v39  ;;  %v2903_v61 = vpop.f32.mrf.mxu0 }
 0x4a9   : > { %v3045_v59 = vpack.c.bf16 %v2901_v7, %v2852_v27  ;;  %v2952_v63 = vpop.f32.mrf.mxu1  ;;  %v2904_v47 = vadd.f32 %v2903_v61, %v5955_v17 }
 0x4aa   : > { %v3046_v9 = vpack.c.bf16 %v2999_v55, %v2950_v57  ;;  %v2953_v33 = vadd.f32 %v2952_v63, %v5962_v12 }
 0x4ab   : > { %3109 = vst [vmem:[%s5833_s15 + $0x70] sm:$0xff] %v3045_v59 }
 0x4ac   : > { %3110 = vst [vmem:[%s5833_s15 + $0x78] sm:$0xff] %v3046_v9 }
 0x4ae   : > { %v2854_v60 = vpop.f32.mrf.mxu3 }
 0x4af   : > { %v2855_v4 = vadd.f32 %v2854_v60, %v5958_v52  ;;  %v3001_v29 = vpop.f32.mrf.mxu2 }
 0x4b0   : > { %v3002_v0 = vadd.f32 %v3001_v29, %v5965_v39  ;;  %v2905_v23 = vpop.f32.mrf.mxu0 }
 0x4b1   : > { %v3049_v20 = vpack.c.bf16 %v2904_v47, %v2855_v4  ;;  %v2954_v10 = vpop.f32.mrf.mxu1  ;;  %v2906_v3 = vadd.f32 %v2905_v23, %v5955_v17 }
 0x4b2   : > { %v3050_v48 = vpack.c.bf16 %v3002_v0, %v2953_v33  ;;  %v2955_v18 = vadd.f32 %v2954_v10, %v5962_v12 }
 0x4b3   : > { %3113 = vst [vmem:[%s5833_s15 + $0x90] sm:$0xff] %v3049_v20 }
 0x4b4   : > { %3114 = vst [vmem:[%s5833_s15 + $0x98] sm:$0xff] %v3050_v48 }
 0x4b6   : > { %v2856_v30 = vpop.f32.mrf.mxu3 }
 0x4b7   : > { %v2857_v25 = vadd.f32 %v2856_v30, %v5958_v52  ;;  %v3003_v26 = vpop.f32.mrf.mxu2 }
 0x4b8   : > { %v3004_v43 = vadd.f32 %v3003_v26, %v5965_v39  ;;  %v2908_v34 = vpop.f32.mrf.mxu0 }
 0x4b9   : > { %v3053_v49 = vpack.c.bf16 %v2906_v3, %v2857_v25  ;;  %v2957_v5 = vpop.f32.mrf.mxu1  ;;  %v2909_v19 = vadd.f32 %v2908_v34, %v5955_v17 }
 0x4ba   : > { %v3054_v35 = vpack.c.bf16 %v3004_v43, %v2955_v18  ;;  %v2958_v36 = vadd.f32 %v2957_v5, %v5962_v12 }
 0x4bb   : > { %3117 = vst [vmem:[%s5833_s15 + $0xb0] sm:$0xff] %v3053_v49 }
 0x4bc   : > { %3118 = vst [vmem:[%s5833_s15 + $0xb8] sm:$0xff] %v3054_v35 }
 0x4be   : > { %v2859_v62 = vpop.f32.mrf.mxu3 }
 0x4bf   : > { %v2860_v37 = vadd.f32 %v2859_v62, %v5958_v52  ;;  %v3006_v45 = vpop.f32.mrf.mxu2 }
 0x4c0   : > { %v3007_v31 = vadd.f32 %v3006_v45, %v5965_v39  ;;  %v2910_v21 = vpop.f32.mrf.mxu0 }
 0x4c1   : > { %v3057_v38 = vpack.c.bf16 %v2909_v19, %v2860_v37  ;;  %v2959_v50 = vpop.f32.mrf.mxu1  ;;  %v2911_v51 = vadd.f32 %v2910_v21, %v5955_v17 }
 0x4c2   : > { %v3058_v14 = vpack.c.bf16 %v3007_v31, %v2958_v36  ;;  %v2960_v46 = vadd.f32 %v2959_v50, %v5962_v12 }
 0x4c3   : > { %3121 = vst [vmem:[%s5833_s15 + $0xd0] sm:$0xff] %v3057_v38 }
 0x4c4   : > { %3122 = vst [vmem:[%s5833_s15 + $0xd8] sm:$0xff] %v3058_v14 }
 0x4c6   : > { %v2861_v41 = vpop.f32.mrf.mxu3 }
 0x4c7   : > { %v2862_v40 = vadd.f32 %v2861_v41, %v5958_v52  ;;  %v3008_v44 = vpop.f32.mrf.mxu2 }
 0x4c8   : > { %v3009_v24 = vadd.f32 %v3008_v44, %v5965_v39  ;;  %v2913_v42 = vpop.f32.mrf.mxu0 }
 0x4c9   : > { %v3061_v6 = vpack.c.bf16 %v2911_v51, %v2862_v40  ;;  %v2962_v16 = vpop.f32.mrf.mxu1  ;;  %v2914_v28 = vadd.f32 %v2913_v42, %v5955_v17 }
 0x4ca   : > { %v3062_v2 = vpack.c.bf16 %v3009_v24, %v2960_v46  ;;  %v2963_v53 = vadd.f32 %v2962_v16, %v5962_v12 }
 0x4cb   : > { %3125 = vst [vmem:[%s5833_s15 + $0xf0] sm:$0xff] %v3061_v6 }
 0x4cc   : > { %3126 = vst [vmem:[%s5833_s15 + $0xf8] sm:$0xff] %v3062_v2 }
 0x4ce   : > { %v2864_v1 = vpop.f32.mrf.mxu3 }
 0x4cf   : > { %v2865_v11 = vadd.f32 %v2864_v1, %v5958_v52  ;;  %v3011_v32 = vpop.f32.mrf.mxu2 }
 0x4d0   : > { %v3012_v15 = vadd.f32 %v3011_v32, %v5965_v39  ;;  %v2915_v8 = vpop.f32.mrf.mxu0 }
 0x4d1   : > { %v3065_v54 = vpack.c.bf16 %v2914_v28, %v2865_v11  ;;  %v2964_v22 = vpop.f32.mrf.mxu1  ;;  %v2916_v7 = vadd.f32 %v2915_v8, %v5955_v17 }
 0x4d2   : > { %v3066_v13 = vpack.c.bf16 %v3012_v15, %v2963_v53  ;;  %v2965_v57 = vadd.f32 %v2964_v22, %v5962_v12 }
 0x4d3   : > { %3129 = vst [vmem:[%s5833_s15 + $0x110] sm:$0xff] %v3065_v54 }
 0x4d4   : > { %3130 = vst [vmem:[%s5833_s15 + $0x118] sm:$0xff] %v3066_v13 }
 0x4d6   : > { %v2866_v56 = vpop.f32.mrf.mxu3 }
 0x4d7   : > { %v2867_v27 = vadd.f32 %v2866_v56, %v5958_v52  ;;  %v3013_v58 = vpop.f32.mrf.mxu2 }
 0x4d8   : > { %v3014_v55 = vadd.f32 %v3013_v58, %v5965_v39  ;;  %v2918_v61 = vpop.f32.mrf.mxu0 }
 0x4d9   : > { %v3069_v59 = vpack.c.bf16 %v2916_v7, %v2867_v27  ;;  %v2967_v63 = vpop.f32.mrf.mxu1  ;;  %v2919_v47 = vadd.f32 %v2918_v61, %v5955_v17 }
 0x4da   : > { %v3070_v9 = vpack.c.bf16 %v3014_v55, %v2965_v57  ;;  %v2968_v33 = vadd.f32 %v2967_v63, %v5962_v12 }
 0x4db   : > { %3133 = vst [vmem:[%s5833_s15 + $0x130] sm:$0xff] %v3069_v59 }
 0x4dc   : > { %3134 = vst [vmem:[%s5833_s15 + $0x138] sm:$0xff] %v3070_v9 }
 0x4de   : > { %v2869_v60 = vpop.f32.mrf.mxu3 }
 0x4df   : > { %v2870_v4 = vadd.f32 %v2869_v60, %v5958_v52  ;;  %v3016_v29 = vpop.f32.mrf.mxu2 }
 0x4e0   : > { %v3017_v0 = vadd.f32 %v3016_v29, %v5965_v39  ;;  %v2920_v23 = vpop.f32.mrf.mxu0 }
 0x4e1   : > { %v3073_v20 = vpack.c.bf16 %v2919_v47, %v2870_v4  ;;  %v2969_v10 = vpop.f32.mrf.mxu1  ;;  %v2921_v3 = vadd.f32 %v2920_v23, %v5955_v17 }
 0x4e2   : > { %v3074_v48 = vpack.c.bf16 %v3017_v0, %v2968_v33  ;;  %v2970_v18 = vadd.f32 %v2969_v10, %v5962_v12 }
 0x4e3   : > { %3137 = vst [vmem:[%s5833_s15 + $0x150] sm:$0xff] %v3073_v20 }
 0x4e4   : > { %3138 = vst [vmem:[%s5833_s15 + $0x158] sm:$0xff] %v3074_v48 }
 0x4e6   : > { %v2871_v30 = vpop.f32.mrf.mxu3 }
 0x4e7   : > { %v2872_v25 = vadd.f32 %v2871_v30, %v5958_v52  ;;  %v3018_v26 = vpop.f32.mrf.mxu2 }
 0x4e8   : > { %v3019_v43 = vadd.f32 %v3018_v26, %v5965_v39  ;;  %v2923_v34 = vpop.f32.mrf.mxu0 }
 0x4e9   : > { %v3077_v49 = vpack.c.bf16 %v2921_v3, %v2872_v25  ;;  %v2972_v5 = vpop.f32.mrf.mxu1  ;;  %v2924_v19 = vadd.f32 %v2923_v34, %v5955_v17 }
 0x4ea   : > { %v3078_v35 = vpack.c.bf16 %v3019_v43, %v2970_v18  ;;  %v2973_v36 = vadd.f32 %v2972_v5, %v5962_v12 }
 0x4eb   : > { %3141 = vst [vmem:[%s5833_s15 + $0x170] sm:$0xff] %v3077_v49 }
 0x4ec   : > { %3142 = vst [vmem:[%s5833_s15 + $0x178] sm:$0xff] %v3078_v35 }
 0x4ee   : > { %v2874_v62 = vpop.f32.mrf.mxu3 }
 0x4ef   : > { %v2875_v37 = vadd.f32 %v2874_v62, %v5958_v52  ;;  %v3021_v45 = vpop.f32.mrf.mxu2 }
 0x4f0   : > { %v3022_v31 = vadd.f32 %v3021_v45, %v5965_v39  ;;  %v2925_v21 = vpop.f32.mrf.mxu0 }
 0x4f1   : > { %v3081_v38 = vpack.c.bf16 %v2924_v19, %v2875_v37  ;;  %v2974_v50 = vpop.f32.mrf.mxu1  ;;  %v2926_v51 = vadd.f32 %v2925_v21, %v5955_v17 }
 0x4f2   : > { %v3082_v14 = vpack.c.bf16 %v3022_v31, %v2973_v36  ;;  %v2975_v46 = vadd.f32 %v2974_v50, %v5962_v12 }
 0x4f3   : > { %3145 = vst [vmem:[%s5833_s15 + $0x190] sm:$0xff] %v3081_v38 }
 0x4f4   : > { %3146 = vst [vmem:[%s5833_s15 + $0x198] sm:$0xff] %v3082_v14 }
 0x4f6   : > { %v2876_v41 = vpop.f32.mrf.mxu3 }
 0x4f7   : > { %v2877_v40 = vadd.f32 %v2876_v41, %v5958_v52  ;;  %v3023_v44 = vpop.f32.mrf.mxu2 }
 0x4f8   : > { %v3024_v24 = vadd.f32 %v3023_v44, %v5965_v39  ;;  %v2928_v16 = vpop.f32.mrf.mxu0 }
 0x4f9   : > { %v3085_v42 = vpack.c.bf16 %v2926_v51, %v2877_v40  ;;  %v2977_v2 = vpop.f32.mrf.mxu1  ;;  %v2929_v28 = vadd.f32 %v2928_v16, %v5955_v17 }
 0x4fa   : > { %v3086_v6 = vpack.c.bf16 %v3024_v24, %v2975_v46  ;;  %v2978_v53 = vadd.f32 %v2977_v2, %v5962_v12 }
 0x4fb   : > { %3149 = vst [vmem:[%s5833_s15 + $0x1b0] sm:$0xff] %v3085_v42 }
 0x4fc   : > { %3150 = vst [vmem:[%s5833_s15 + $0x1b8] sm:$0xff] %v3086_v6 }
 0x4fe   : > { %v2879_v1 = vpop.f32.mrf.mxu3 }
 0x4ff   : > { %v2880_v11 = vadd.f32 %v2879_v1, %v5958_v52  ;;  %v3026_v32 = vpop.f32.mrf.mxu2 }
 0x500   : > { %v3027_v15 = vadd.f32 %v3026_v32, %v5965_v39  ;;  %v2930_v22 = vpop.f32.mrf.mxu0 }
 0x501   : > { %v3089_v8 = vpack.c.bf16 %v2929_v28, %v2880_v11  ;;  %v2979_v13 = vpop.f32.mrf.mxu1  ;;  %v2931_v7 = vadd.f32 %v2930_v22, %v5955_v17 }
 0x502   : > { %v3090_v54 = vpack.c.bf16 %v3027_v15, %v2978_v53  ;;  %v2980_v57 = vadd.f32 %v2979_v13, %v5962_v12 }
 0x503   : > { %3153 = vst [vmem:[%s5833_s15 + $0x1d0] sm:$0xff] %v3089_v8 }
 0x504   : > { %3154 = vst [vmem:[%s5833_s15 + $0x1d8] sm:$0xff] %v3090_v54 }
 0x506   : > { %v2881_v56 = vpop.f32.mrf.mxu3 }
 0x507   : > { %v2882_v27 = vadd.f32 %v2881_v56, %v5958_v52  ;;  %v3028_v58 = vpop.f32.mrf.mxu2 }
 0x508   : > { %v3029_v55 = vadd.f32 %v3028_v58, %v5965_v39 }
 0x509   : > { %v3093_v61 = vpack.c.bf16 %v2931_v7, %v2882_v27 }
 0x50a   : > { %v3094_v59 = vpack.c.bf16 %v3029_v55, %v2980_v57 }
 0x50b   : > { %3157 = vst [vmem:[%s5833_s15 + $0x1f0] sm:$0xff] %v3093_v61 }
 0x50c   : > { %3158 = vst [vmem:[%s5833_s15 + $0x1f8] sm:$0xff] %v3094_v59 }
 0x50d   : > { %4993 = shalt.err (!%p4990_p8)
}
 0x50e   : > { %s5069_s11 = smov 512   ;;  %s5070_s15 = smov 32  }
 0x50f   : > { %4427 = dma.vmem_to_hbm [thread:$0]  (%p5239_p12), %s3174_s25, 8192, %s3176_s4, %s3160_s24, %s5069_s11, %s5069_s11, %s5070_s15  }
 0x510 PF: > { %p4484_p9 = scmp.ge.s32.totalorder %s5052_s20, 2  ;;  %s3190_s26 = sand.u32 1, %s5040_s17  }
 0x511   : > { %s3191_s23 = scalar_lea.sflag [#allocation4], %s3190_s26 }
 0x512   : > { %p4462_p10 = pnand %p4484_p9, %p5244_p2 }
 0x514   : > { %p4463_p13 = pneg %p4462_p10 }
 0x516   : > { %5035 = dma.done.wait (%p4463_p13), %s3191_s23, 8192  }
 0x517   : > { %5037 = vsyncadd (%p4463_p13), %s3191_s23, 4294959104  ;;  %p29_p0 = scmp.ge.s32.totalorder %s5219_s29, 10   ;;  %s6129_s17 = smov %s5044_s18 }
 0x518   : > { %s6130_s18 = smov %s5048_s19  ;;  %s6131_s19 = smov %s5231_s16 }
 0x519   : > { %s6132_s20 = smov %s5219_s29  ;;  %31 = sbr.rel (!%p29_p0) target bundleno = 16 (0x10), region = 145 }
 0x51e   :  { %3197 = vsyncpa [#allocation3], 1 }
 0x51f   :  { %3199 = vsyncpa [#allocation3 + $0x1], 1 }
 0x520   :  { %3200 = vsyncpa [#allocation6], 1 }
 0x521   :  { %3201 = vsyncpa [#allocation9], 1 }
 0x522   :  { %3202 = vsyncpa [#allocation12], 1 }
 0x523   :  { %3203 = vsyncpa [#allocation15], 1 }
 0x524   :  { %3204 = vsyncpa [#allocation18], 1 }
 0x525   :  { %3205 = vsyncpa [#allocation4], 1 }
 0x526   :  { %3207 = vsyncpa [#allocation4 + $0x1], 1 }

</bundles_post_ra>
